<compile_context>
chip_gen: v7x
topology: tpu7x:2x2x1
jax: 0.10.0
libtpu: 0.0.40
codegen_flags: <defaults>
</compile_context>

<pallas_src>
import math

import jax
import jax.numpy as jnp
from jax.experimental import pallas as pl
from jax.experimental.pallas import tpu as pltpu


def mlp_kernel(x_ref,
               w1_ref, b1_ref,
               w2_ref, b2_ref,
               w3_ref, b3_ref,
               w4_ref, b4_ref,
               o_ref):
    """Fused 4-layer MLP; BN pre-folded into weights, dropout = identity."""
    # layer_1 (+ folded batchnorm1) -> relu
    h = jnp.dot(x_ref[...], w1_ref[...],
                preferred_element_type=jnp.float32) + b1_ref[...]
    h = jnp.maximum(h, 0.0)

    # layer_2 (+ folded batchnorm2) -> relu   (dropout = identity in eval)
    h = jnp.dot(h.astype(w2_ref.dtype), w2_ref[...],
                preferred_element_type=jnp.float32) + b2_ref[...]
    h = jnp.maximum(h, 0.0)

    # layer_3 (+ folded batchnorm3) -> relu   (dropout = identity in eval)
    h = jnp.dot(h.astype(w3_ref.dtype), w3_ref[...],
                preferred_element_type=jnp.float32) + b3_ref[...]
    h = jnp.maximum(h, 0.0)

    # layer_out (lane-dense: padded to 128 output columns)
    o_ref[...] = jnp.dot(h.astype(w4_ref.dtype), w4_ref[...],
                         preferred_element_type=jnp.float32) + b4_ref[...]


def _round_up(n, m):
    return ((n + m - 1) // m) * m


def _fold_bn_into_linear(w, b, gamma, beta, mean, var, eps=1e-5):
    """Fold eval-mode BatchNorm1d into the preceding Linear (w:[in,out])."""
    scale = gamma / jnp.sqrt(var + eps)          # [out]
    shift = beta - mean * scale                  # [out]
    return w * scale[None, :], b * scale + shift


def _pad2d(a, rows, cols):
    return jnp.pad(a, ((0, rows - a.shape[0]), (0, cols - a.shape[1])))


def _pad1d(a, n):
    return jnp.pad(a, (0, n - a.shape[0]))


def multiclass_forward(x, params, *, tile_b=256, matmul_dtype=jnp.float32):
    """x: [B, num_feature] float32 -> logits [B, num_class] float32."""
    (w1, b1, bn1, w2, b2, bn2, w3, b3, bn3, w4, b4) = params
    B, F = x.shape
    num_class = w4.shape[1]

    # ---- Host-side algebra: fold BN, pad to lane-dense widths -------------
    w1f, b1f = _fold_bn_into_linear(w1, b1, *bn1)    # [F,512],  [512]
    w2f, b2f = _fold_bn_into_linear(w2, b2, *bn2)    # [512,128],[128]
    w3f, b3f = _fold_bn_into_linear(w3, b3, *bn3)    # [128,64], [64]

    H3 = 128                                  # pad 64-wide hidden layer
    NOUT = _round_up(max(num_class, 1), 128)  # pad class dim to 128 lanes
    w3p = _pad2d(w3f, w3f.shape[0], H3)       # zero cols 64:128
    b3p = _pad1d(b3f, H3)
    w4p = _pad2d(w4, H3, NOUT)                # zero rows 64:128, zero cols C:
    b4p = _pad1d(b4, NOUT)

    # ---- Batch tiling ------------------------------------------------------
    tile_b = max(8, min(tile_b, _round_up(B, 8)))
    B_pad = _round_up(B, tile_b)
    if B_pad != B:
        x = jnp.pad(x, ((0, B_pad - B), (0, 0)))
    grid = (B_pad // tile_b,)

    # matmul operands optionally in bf16 (accumulation stays f32 in-kernel)
    xm = x.astype(matmul_dtype)
    w1m = w1f.astype(matmul_dtype)
    w2m = w2f.astype(matmul_dtype)
    w3m = w3p.astype(matmul_dtype)
    w4m = w4p.astype(matmul_dtype)
    b1r = b1f.reshape(1, -1).astype(jnp.float32)
    b2r = b2f.reshape(1, -1).astype(jnp.float32)
    b3r = b3p.reshape(1, -1).astype(jnp.float32)
    b4r = b4p.reshape(1, -1).astype(jnp.float32)

    args = (xm, w1m, b1r, w2m, b2r, w3m, b3r, w4m, b4r)

    # x / out tiles move per grid step; weights & biases are block (0,0) every
    # step, so they are DMA'd once and stay resident in VMEM.
    in_specs = [
        pl.BlockSpec((tile_b, F), lambda i: (i, 0)),
        pl.BlockSpec(w1m.shape, lambda i: (0, 0)),
        pl.BlockSpec(b1r.shape, lambda i: (0, 0)),
        pl.BlockSpec(w2m.shape, lambda i: (0, 0)),
        pl.BlockSpec(b2r.shape, lambda i: (0, 0)),
        pl.BlockSpec(w3m.shape, lambda i: (0, 0)),
        pl.BlockSpec(b3r.shape, lambda i: (0, 0)),
        pl.BlockSpec(w4m.shape, lambda i: (0, 0)),
        pl.BlockSpec(b4r.shape, lambda i: (0, 0)),
    ]
    out_specs = pl.BlockSpec((tile_b, NOUT), lambda i: (i, 0))

    flops = 2 * B_pad * (F * 512 + 512 * 128 + 128 * H3 + H3 * NOUT)
    bytes_accessed = int(sum(int(a.size) * a.dtype.itemsize for a in args)
                         + B_pad * NOUT * 4)
    cost = pl.CostEstimate(flops=flops, transcendentals=0,
                           bytes_accessed=bytes_accessed)

    out_padded = pl.pallas_call(
        mlp_kernel,
        out_shape=jax.ShapeDtypeStruct((B_pad, NOUT), jnp.float32),
        grid=grid,
        in_specs=in_specs,
        out_specs=out_specs,
        compiler_params=pltpu.CompilerParams(
            dimension_semantics=("parallel",)),
        cost_estimate=cost,
    )(*args)

    return out_padded[:B, :num_class]


def init_params(key, num_feature, num_class):
    """PyTorch-style Linear init + non-trivial eval-mode BatchNorm stats."""
    dims = [(num_feature, 512), (512, 128), (128, 64), (64, num_class)]
    n_lin = 2 * len(dims)
    keys = jax.random.split(key, n_lin + 12)

    lin = []
    for i, (fan_in, fan_out) in enumerate(dims):
        bound = 1.0 / math.sqrt(fan_in)
        w = jax.random.uniform(keys[2 * i], (fan_in, fan_out),
                               minval=-bound, maxval=bound, dtype=jnp.float32)
        b = jax.random.uniform(keys[2 * i + 1], (fan_out,),
                               minval=-bound, maxval=bound, dtype=jnp.float32)
        lin.append((w, b))

    def bn_init(n, ks):
        gamma = jax.random.uniform(ks[0], (n,), minval=0.5, maxval=1.5,
                                   dtype=jnp.float32)
        beta = 0.1 * jax.random.normal(ks[1], (n,), dtype=jnp.float32)
        mean = 0.1 * jax.random.normal(ks[2], (n,), dtype=jnp.float32)
        var = jax.random.uniform(ks[3], (n,), minval=0.5, maxval=1.5,
                                 dtype=jnp.float32)
        return (gamma, beta, mean, var)

    bn1 = bn_init(512, keys[n_lin:n_lin + 4])
    bn2 = bn_init(128, keys[n_lin + 4:n_lin + 8])
    bn3 = bn_init(64, keys[n_lin + 8:n_lin + 12])

    (w1, b1), (w2, b2), (w3, b3), (w4, b4) = lin
    return (w1, b1, bn1, w2, b2, bn2, w3, b3, bn3, w4, b4)


def reference_forward(x, params):
    """Pure-JAX reference using the un-folded (Linear -> BN -> ReLU) math."""
    (w1, b1, bn1, w2, b2, bn2, w3, b3, bn3, w4, b4) = params

    def bn(h, gamma, beta, mean, var, eps=1e-5):
        return (h - mean) / jnp.sqrt(var + eps) * gamma + beta

    h = x @ w1 + b1
    h = jnp.maximum(bn(h, *bn1), 0.0)
    h = h @ w2 + b2
    h = jnp.maximum(bn(h, *bn2), 0.0)
    h = h @ w3 + b3
    h = jnp.maximum(bn(h, *bn3), 0.0)
    return h @ w4 + b4


if __name__ == "__main__":
    # Small but MXU-meaningful shapes: batch 256 (2 grid steps of 128 rows),
    # 160 fMRI features, 5 classes.
    B, num_feature, num_class = 256, 160, 5

    key = jax.random.PRNGKey(0)
    k_x, k_p = jax.random.split(key)
    x = jax.random.normal(k_x, (B, num_feature), dtype=jnp.float32)
    params = init_params(k_p, num_feature, num_class)

    ref = reference_forward(x, params)

    # f32 path
    out = jax.block_until_ready(multiclass_forward(x, params, tile_b=128))
    assert out.shape == (B, num_class)
    assert jnp.allclose(out, ref, atol=1e-2, rtol=1e-2), "f32 mismatch vs ref"

    # bf16 matmul inputs (f32 accumulation), looser tolerance
    out_bf16 = jax.block_until_ready(
        multiclass_forward(x, params, tile_b=128, matmul_dtype=jnp.bfloat16))
    assert out_bf16.shape == (B, num_class)
    assert jnp.allclose(out_bf16, ref, atol=0.2, rtol=0.2), "bf16 mismatch"

    print("KERNEL_OK")
</pallas_src>

<mosaic_0001>
module attributes {stable_mosaic.version = 11 : i64} {
  func.func @mlp_kernel(%arg0: i32, %arg1: memref<128x160xf32, #tpu.memory_space<vmem>>, %arg2: memref<160x512xf32, #tpu.memory_space<vmem>>, %arg3: memref<1x512xf32, #tpu.memory_space<vmem>>, %arg4: memref<512x128xf32, #tpu.memory_space<vmem>>, %arg5: memref<1x128xf32, #tpu.memory_space<vmem>>, %arg6: memref<128x128xf32, #tpu.memory_space<vmem>>, %arg7: memref<1x128xf32, #tpu.memory_space<vmem>>, %arg8: memref<128x128xf32, #tpu.memory_space<vmem>>, %arg9: memref<1x128xf32, #tpu.memory_space<vmem>>, %arg10: memref<128x128xf32, #tpu.memory_space<vmem>>) attributes {dimension_semantics = [#tpu.dimension_semantics<parallel>], iteration_bounds = array<i64: 2>, scalar_prefetch = 0 : i64, scratch_operands = 0 : i64, tpu.core_type = #tpu.core_type<tc>, window_params = [{transform_indices = @transform_0, window_bounds = array<i64: 128, 160>}, {pipeline_mode = #tpu.pipeline_mode<synchronous>, transform_indices = @transform_1, window_bounds = array<i64: 160, 512>}, {pipeline_mode = #tpu.pipeline_mode<synchronous>, transform_indices = @transform_2, window_bounds = array<i64: 1, 512>}, {pipeline_mode = #tpu.pipeline_mode<synchronous>, transform_indices = @transform_3, window_bounds = array<i64: 512, 128>}, {pipeline_mode = #tpu.pipeline_mode<synchronous>, transform_indices = @transform_4, window_bounds = array<i64: 1, 128>}, {pipeline_mode = #tpu.pipeline_mode<synchronous>, transform_indices = @transform_5, window_bounds = array<i64: 128, 128>}, {pipeline_mode = #tpu.pipeline_mode<synchronous>, transform_indices = @transform_6, window_bounds = array<i64: 1, 128>}, {pipeline_mode = #tpu.pipeline_mode<synchronous>, transform_indices = @transform_7, window_bounds = array<i64: 128, 128>}, {pipeline_mode = #tpu.pipeline_mode<synchronous>, transform_indices = @transform_8, window_bounds = array<i64: 1, 128>}, {transform_indices = @transform_9, window_bounds = array<i64: 128, 128>}]} {
    %c0 = arith.constant 0 : index
    %c0_0 = arith.constant 0 : index
    %0 = vector.load %arg1[%c0, %c0_0] : memref<128x160xf32, #tpu.memory_space<vmem>>, vector<128x160xf32>
    %c0_1 = arith.constant 0 : index
    %c0_2 = arith.constant 0 : index
    %1 = vector.load %arg2[%c0_1, %c0_2] : memref<160x512xf32, #tpu.memory_space<vmem>>, vector<160x512xf32>
    %cst = arith.constant dense<0.000000e+00> : vector<128x512xf32>
    %2 = tpu.matmul %0, %1, %cst {dimension_numbers = #tpu.dot_dimension_numbers<[1], [0], [0], [1], [0, 0, 1, 1], [], []>} : vector<128x160xf32>, vector<160x512xf32>, vector<128x512xf32> -> vector<128x512xf32>
    %c0_3 = arith.constant 0 : index
    %c0_4 = arith.constant 0 : index
    %3 = vector.load %arg3[%c0_3, %c0_4] : memref<1x512xf32, #tpu.memory_space<vmem>>, vector<1x512xf32>
    %4 = vector.broadcast %3 : vector<1x512xf32> to vector<128x512xf32>
    %5 = arith.addf %2, %4 : vector<128x512xf32>
    %cst_5 = arith.constant 0.000000e+00 : f32
    %6 = vector.broadcast %cst_5 : f32 to vector<128x512xf32>
    %7 = arith.maximumf %5, %6 : vector<128x512xf32>
    %c0_6 = arith.constant 0 : index
    %c0_7 = arith.constant 0 : index
    %8 = vector.load %arg4[%c0_6, %c0_7] : memref<512x128xf32, #tpu.memory_space<vmem>>, vector<512x128xf32>
    %cst_8 = arith.constant dense<0.000000e+00> : vector<128x128xf32>
    %9 = tpu.matmul %7, %8, %cst_8 {dimension_numbers = #tpu.dot_dimension_numbers<[1], [0], [0], [1], [0, 0, 1, 1], [], []>} : vector<128x512xf32>, vector<512x128xf32>, vector<128x128xf32> -> vector<128x128xf32>
    %c0_9 = arith.constant 0 : index
    %c0_10 = arith.constant 0 : index
    %10 = vector.load %arg5[%c0_9, %c0_10] : memref<1x128xf32, #tpu.memory_space<vmem>>, vector<1x128xf32>
    %11 = vector.broadcast %10 : vector<1x128xf32> to vector<128x128xf32>
    %12 = arith.addf %9, %11 : vector<128x128xf32>
    %cst_11 = arith.constant 0.000000e+00 : f32
    %13 = vector.broadcast %cst_11 : f32 to vector<128x128xf32>
    %14 = arith.maximumf %12, %13 : vector<128x128xf32>
    %c0_12 = arith.constant 0 : index
    %c0_13 = arith.constant 0 : index
    %15 = vector.load %arg6[%c0_12, %c0_13] : memref<128x128xf32, #tpu.memory_space<vmem>>, vector<128x128xf32>
    %cst_14 = arith.constant dense<0.000000e+00> : vector<128x128xf32>
    %16 = tpu.matmul %14, %15, %cst_14 {dimension_numbers = #tpu.dot_dimension_numbers<[1], [0], [0], [1], [0, 0, 1, 1], [], []>} : vector<128x128xf32>, vector<128x128xf32>, vector<128x128xf32> -> vector<128x128xf32>
    %c0_15 = arith.constant 0 : index
    %c0_16 = arith.constant 0 : index
    %17 = vector.load %arg7[%c0_15, %c0_16] : memref<1x128xf32, #tpu.memory_space<vmem>>, vector<1x128xf32>
    %18 = vector.broadcast %17 : vector<1x128xf32> to vector<128x128xf32>
    %19 = arith.addf %16, %18 : vector<128x128xf32>
    %cst_17 = arith.constant 0.000000e+00 : f32
    %20 = vector.broadcast %cst_17 : f32 to vector<128x128xf32>
    %21 = arith.maximumf %19, %20 : vector<128x128xf32>
    %c0_18 = arith.constant 0 : index
    %c0_19 = arith.constant 0 : index
    %22 = vector.load %arg8[%c0_18, %c0_19] : memref<128x128xf32, #tpu.memory_space<vmem>>, vector<128x128xf32>
    %cst_20 = arith.constant dense<0.000000e+00> : vector<128x128xf32>
    %23 = tpu.matmul %21, %22, %cst_20 {dimension_numbers = #tpu.dot_dimension_numbers<[1], [0], [0], [1], [0, 0, 1, 1], [], []>} : vector<128x128xf32>, vector<128x128xf32>, vector<128x128xf32> -> vector<128x128xf32>
    %c0_21 = arith.constant 0 : index
    %c0_22 = arith.constant 0 : index
    %24 = vector.load %arg9[%c0_21, %c0_22] : memref<1x128xf32, #tpu.memory_space<vmem>>, vector<1x128xf32>
    %25 = vector.broadcast %24 : vector<1x128xf32> to vector<128x128xf32>
    %26 = arith.addf %23, %25 : vector<128x128xf32>
    %c0_23 = arith.constant 0 : index
    %c0_24 = arith.constant 0 : index
    %27 = vector.load %arg10[%c0_23, %c0_24] : memref<128x128xf32, #tpu.memory_space<vmem>>, vector<128x128xf32>
    tpu.vector_store %arg10[%c0_23, %c0_24], %26 {strides = array<i32>} : memref<128x128xf32, #tpu.memory_space<vmem>>, vector<128x128xf32>,
    return
  }
  func.func @transform_0(%arg0: i32) -> (i32, i32) {
    %c0_i32 = arith.constant 0 : i32
    %c0_i32_0 = arith.constant 0 : i32
    return %arg0, %c0_i32 : i32, i32
  }
  func.func @transform_1(%arg0: i32) -> (i32, i32) {
    %c0_i32 = arith.constant 0 : i32
    %c0_i32_0 = arith.constant 0 : i32
    %c0_i32_1 = arith.constant 0 : i32
    return %c0_i32, %c0_i32_0 : i32, i32
  }
  func.func @transform_2(%arg0: i32) -> (i32, i32) {
    %c0_i32 = arith.constant 0 : i32
    %c0_i32_0 = arith.constant 0 : i32
    %c0_i32_1 = arith.constant 0 : i32
    return %c0_i32, %c0_i32_0 : i32, i32
  }
  func.func @transform_3(%arg0: i32) -> (i32, i32) {
    %c0_i32 = arith.constant 0 : i32
    %c0_i32_0 = arith.constant 0 : i32
    %c0_i32_1 = arith.constant 0 : i32
    return %c0_i32, %c0_i32_0 : i32, i32
  }
  func.func @transform_4(%arg0: i32) -> (i32, i32) {
    %c0_i32 = arith.constant 0 : i32
    %c0_i32_0 = arith.constant 0 : i32
    %c0_i32_1 = arith.constant 0 : i32
    return %c0_i32, %c0_i32_0 : i32, i32
  }
  func.func @transform_5(%arg0: i32) -> (i32, i32) {
    %c0_i32 = arith.constant 0 : i32
    %c0_i32_0 = arith.constant 0 : i32
    %c0_i32_1 = arith.constant 0 : i32
    return %c0_i32, %c0_i32_0 : i32, i32
  }
  func.func @transform_6(%arg0: i32) -> (i32, i32) {
    %c0_i32 = arith.constant 0 : i32
    %c0_i32_0 = arith.constant 0 : i32
    %c0_i32_1 = arith.constant 0 : i32
    return %c0_i32, %c0_i32_0 : i32, i32
  }
  func.func @transform_7(%arg0: i32) -> (i32, i32) {
    %c0_i32 = arith.constant 0 : i32
    %c0_i32_0 = arith.constant 0 : i32
    %c0_i32_1 = arith.constant 0 : i32
    return %c0_i32, %c0_i32_0 : i32, i32
  }
  func.func @transform_8(%arg0: i32) -> (i32, i32) {
    %c0_i32 = arith.constant 0 : i32
    %c0_i32_0 = arith.constant 0 : i32
    %c0_i32_1 = arith.constant 0 : i32
    return %c0_i32, %c0_i32_0 : i32, i32
  }
  func.func @transform_9(%arg0: i32) -> (i32, i32) {
    %c0_i32 = arith.constant 0 : i32
    %c0_i32_0 = arith.constant 0 : i32
    return %arg0, %c0_i32 : i32, i32
  }
}

</mosaic_0001>

<bundles_post_ra>
// kernel: tpu_custom_call.1
= control target key start
LH: loop header
LB: loop body
LE: loop exit
PB: predicated region body
PF: predicated region fallthrough
CT: control target
= control target key end

     0   :  { %14 = vsyncpa [#allocation3], 0  ;;  %s3288_s0 = inlined_call_operand.vmem [shape: f32[256,160], index: 0, kind: input, shape index: {}]   ;;  %s3289_s1 = inlined_call_operand.vmem [shape: f32[160,512], index: 1, kind: input, shape index: {}]   ;;  %s3290_s2 = inlined_call_operand.vmem [shape: f32[1,512], index: 2, kind: input, shape index: {}]   ;;  %s3291_s3 = inlined_call_operand.hbm [shape: f32[512,128], index: 3, kind: input, shape index: {}]   ;;  %s3292_s4 = inlined_call_operand.vmem [shape: f32[1,128], index: 4, kind: input, shape index: {}]   ;;  %s3293_s5 = inlined_call_operand.vmem [shape: f32[128,128], index: 5, kind: input, shape index: {}]   ;;  %s3294_s6 = inlined_call_operand.vmem [shape: f32[1,128], index: 6, kind: input, shape index: {}]   ;;  %s3295_s7 = inlined_call_operand.hbm [shape: f32[128,128], index: 7, kind: input, shape index: {}]   ;;  %s3296_s8 = inlined_call_operand.vmem [shape: f32[1,128], index: 8, kind: input, shape index: {}]   ;;  %s3297_s9 = inlined_call_operand.hbm [shape: f32[256,128], index: 9, kind: output, shape index: {}]  }
   0x1   :  { %15 = vsyncpa [#allocation6], 0 }
   0x2   :  { %16 = vsyncpa [#allocation4], 0 }
   0x3   :  { %18 = vsyncpa [#allocation4 + $0x1], 0  ;;  %s2626_s30 = smov 0   ;;  %s2628_s10 = smov 0  }
   0x4   :  { %s2630_s11 = smov 0   ;;  %s2632_s12 = smov 0  }
   0x5 LB: > { %3304 = sst [smem:[#allocation11_spill]] %s2563_s11  ;;  %s2647_s13 = sadd.s32 4294967295, %s2567_s12   ;;  %s2567_s12 = sphi %s2632_s12, %s3319_s12   ;;  %s2563_s11 = sphi %s2630_s11, %s3321_s11   ;;  %s2559_s10 = sphi %s2628_s10, %s3323_s10   ;;  %s2555_s30 = sphi %s2626_s30, %s3322_s30  }
   0x6   : > { %s1779_s14 = sadd.s32 4294967294, %s2567_s12   ;;  %s2651_s15 = sadd.s32 1, %s2567_s12  }
   0x7   : > { %3305 = sst [smem:[#allocation12_spill]] %s2651_s15  ;;  %s225_s16 = sadd.s32 1, %s2563_s11 }
   0x8   : > { %s222_s17 = ssub.s32 %s2567_s12, %s2651_s15  ;;  %p235_p0 = scmp.ne.s32.totalorder %s2563_s11, %s2559_s10 }
   0x9   : > { %p223_p1 = scmp.eq.s32.totalorder %s222_s17, 0  ;;  %p236_p2 = scmp.eq.s32.totalorder %s2647_s13, 1 }
   0xa   : > { %p241_p3 = scmp.ne.s32.totalorder %s2559_s10, %s2555_s30  ;;  %p242_p4 = scmp.eq.s32.totalorder %s1779_s14, 1 }
   0xb   : > { %s2662_s18 = scalar_select %p223_p1, %s2563_s11, %s225_s16  }
   0xc   : > { %p2664_p5 = por %p236_p2, %p235_p0  ;;  %p2668_p6 = por %p242_p4, %p241_p3 }
   0xd   : > { %3306 = sst [smem:[#allocation13_spill]] %s2662_s18  ;;  %p1780_p7 = scmp.ge.s32.totalorder %s2567_s12, 1 }
   0xe   : > { %s3307_s19 = scalar_select %p2664_p5, 1, 0 }
   0xf   : > { %s3308_s20 = scalar_select %p2668_p6, 1, 0 }
  0x10   : > { %p249_p8 = scmp.lt.s32.totalorder %s2567_s12, 3  ;;  %p3298_p9 = scmp.eq.s32.totalorder %s2647_s13, 0 }
  0x11   : > { %s2569_s22 = smov [#allocation2]   ;;  %s2570_s25 = smov [#allocation5]  }
  0x12   : > { %p2675_p10 = pnand %p1780_p7, %p249_p8  ;;  %s267_s23 = sshll.u32 %s2569_s22, 4  ;;  %s268_s23 = int_to_ptr.vmem [resolvable:$true] %s267_s23 }
  0x13   : > { %s289_s26 = sshll.u32 %s2570_s25, 4  ;;  %s2441_s29 = scalar_lea.hbm %s3291_s3, 8192  ;;  %s2687_s26 = int_to_ptr.vmem [resolvable:$true] %s289_s26 }
  0x14   : > { %s3309_s21 = scalar_select %p2675_p10, 1, 0 }
  0x15   : > { %p2387_p11 = pneg %p2675_p10  ;;  %p2442_p13 = scmp.ne.s32.totalorder %s3291_s3, %s2441_s29 }
  0x16   : > { %p2448_p3 = scmp.lt.u32.totalorder %s2441_s29, %s3291_s3 }
  0x17   : > { %p2683_p12 = pnand %p3298_p9, %p2387_p11 }
  0x19   : > { %p2443_p0 = pneg %p2683_p12 }
  0x1b   : > { %p2444_p1 = pnand %p2443_p0, %p2442_p13 }
  0x1d   : > { %p2445_p2 = pneg %p2444_p1 }
  0x1f   : > { %p2450_p4 = pnand %p2448_p3, %p2445_p2 }
  0x21   : > { %2453 = shalt.err (!%p2450_p4)
}
  0x22   : > { %s2454_s25 = scalar_lea.vmem %s268_s23, 8192  ;;  %p2462_p9 = scmp.lt.s32.totalorder %s268_s23, %s268_s23 }
  0x23   : > { %p2455_p7 = scmp.ne.s32.totalorder %s268_s23, %s2454_s25  ;;  %p2463_p6 = scmp.lt.s32.totalorder %s2454_s25, %s2454_s25 }
  0x25   : > { %p2457_p8 = pnand %p2455_p7, %p2443_p0  ;;  %p2464_p5 = por %p2463_p6, %p2462_p9 }
  0x27   : > { %p2458_p11 = pneg %p2457_p8 }
  0x29   : > { %p2465_p10 = pnand %p2464_p5, %p2458_p11 }
  0x2b   : > { %2468 = shalt.err (!%p2465_p10)
}
  0x2c   : > { %s2571_s27 = smov 128   ;;  %s2572_s28 = smov 8  }
  0x2d   : > { %2390 = dma.hbm_to_vmem [thread:$0]  (!%p2683_p12), %s3291_s3, 8192, %s268_s23, [#allocation3], %s2571_s27, %s2571_s27, %s2572_s28  }
  0x2e   : > { %s2469_s22 = scalar_lea.hbm %s3295_s7, 2048 }
  0x2f   : > { %p2470_p13 = scmp.ne.s32.totalorder %s3295_s7, %s2469_s22  ;;  %p2476_p9 = scmp.lt.u32.totalorder %s2469_s22, %s3295_s7 }
  0x31   : > { %p2472_p5 = pnand %p2470_p13, %p2443_p0 }
  0x33   : > { %p2473_p6 = pneg %p2472_p5 }
  0x35   : > { %p2478_p10 = pnand %p2476_p9, %p2473_p6 }
  0x37   : > { %2481 = shalt.err (!%p2478_p10)
}
  0x38   : > { %s2482_s23 = scalar_lea.vmem %s2687_s26, 2048  ;;  %p2490_p4 = scmp.lt.s32.totalorder %s2687_s26, %s2687_s26 }
  0x39   : > { %p2483_p1 = scmp.ne.s32.totalorder %s2687_s26, %s2482_s23  ;;  %p2491_p7 = scmp.lt.s32.totalorder %s2482_s23, %s2482_s23 }
  0x3b   : > { %p2485_p2 = pnand %p2483_p1, %p2443_p0  ;;  %p2492_p8 = por %p2491_p7, %p2490_p4 }
  0x3d   : > { %p2486_p3 = pneg %p2485_p2 }
  0x3f   : > { %p2493_p11 = pnand %p2492_p8, %p2486_p3 }
  0x41   : > { %2496 = shalt.err (!%p2493_p11)
}
  0x42   : > { %2393 = dma.hbm_to_vmem [thread:$0]  (!%p2683_p12), %s3295_s7, 2048, %s2687_s26, [#allocation6], %s2571_s27, %s2571_s27, %s2572_s28  }
  0x43   : > { %p3311_p13 = scmp.ne.s32.totalorder %s3309_s21, 0 }
  0x44   : > { %p3312_p5 = scmp.eq.s32.totalorder (!%p3311_p13), %s2647_s13, 0 }
  0x45   : > { %318 = sbr.rel (%p3311_p13) target bundleno = 1072 (0x430), region = 56 }
  0x4c   : > { %2542 = dma.done.wait (%p3312_p5), [#allocation3], 8192   ;;  %p3313_p0 = pmov %p3312_p5 }
  0x4e   : > { %2544 = vsyncadd (%p3313_p0), [#allocation3], 4294959104  ;;  %p3314_p6 = pmov %p3313_p0 }
  0x4f   : > { %p3315_p9 = pmov %p3313_p0 }
  0x50   : > { %2546 = dma.done.wait (%p3314_p6), [#allocation6], 2048  }
  0x51   : > { %2548 = vsyncadd (%p3315_p9), [#allocation6], 4294965248  ;;  %v400_v0 = vld [vmem:[%s3289_s1 + $0x8] sm:$0xff]  ;;  %v402_v2 = vld [vmem:[%s3289_s1 + $0x18] sm:$0xff]  ;;  %s1788_s18 = sshll.u32 %s2647_s13, 4  ;;  %vm501_vm0 = vcmask 261120  }
  0x52   : > { %v404_v1 = vld [vmem:[%s3289_s1 + $0x28] sm:$0xff]  ;;  %v406_v4 = vld [vmem:[%s3289_s1 + $0x38] sm:$0xff]  ;;  %v399_v5 = vld [vmem:[%s3289_s1] sm:$0xff]  ;;  %p2855_p12 = scmp.lt.s32.totalorder %s1788_s18, 31  ;;  %s356_s24 = sand.u32 1, %s2559_s10  }
  0x53   : > { %v2169_v3 = vpack.c.bf16 %v404_v1, %v400_v0  ;;  %v403_v6 = vld [vmem:[%s3289_s1 + $0x20] sm:$0xff]  ;;  %v2209_v7 = vpack.c.bf16 %v406_v4, %v402_v2  ;;  %v401_v9 = vld [vmem:[%s3289_s1 + $0x10] sm:$0xff]  ;;  %v408_v11 = vld [vmem:[%s3289_s1 + $0x48] sm:$0xff]  ;;  %s1832_s29 = sshll.u32 %s2647_s13, 11  ;;  %s3247_s25 = scalar_lea.sflag [#allocation4], %s356_s24 }
  0x54   : > { %v2171_v8 = vpack.c.bf16 %v403_v6, %v399_v5  ;;  %v405_v10 = vld [vmem:[%s3289_s1 + $0x30] sm:$0xff]  ;;  %v412_v13 = vld [vmem:[%s3289_s1 + $0x68] sm:$0xff]  ;;  %v410_v14 = vld [vmem:[%s3289_s1 + $0x58] sm:$0xff]  ;;  %s3325_s18 = smov (!%p2855_p12, %s1788_s18), 31  ;;  %s3239_s22 = scalar_lea.hbm %s3297_s9, %s1832_s29 }
  0x55   : > { %2170 = vmatprep.subr.bf16.mxu0 %v2169_v3  ;;  %v2211_v12 = vpack.c.bf16 %v405_v10, %v401_v9  ;;  %v414_v15 = vld [vmem:[%s3289_s1 + $0x78] sm:$0xff]  ;;  %2210 = vmatprep.subr.bf16.mxu1 %v2209_v7  ;;  %v2173_v16 = vpack.c.bf16 %v412_v13, %v408_v11  ;;  %v407_v18 = vld [vmem:[%s3289_s1 + $0x40] sm:$0xff]  ;;  %v409_v20 = vld [vmem:[%s3289_s1 + $0x50] sm:$0xff]  ;;  %s1831_s28 = sshll.u32 %s3325_s18, 4  ;;  %p3317_p1 = scmp.ne.s32.totalorder %s3307_s19, 0 }
  0x56   : > { %2172 = vmatpush1.bf16.msra.mxu0 %v2171_v8  ;;  %v2213_v17 = vpack.c.bf16 %v414_v15, %v410_v14  ;;  %v411_v19 = vld [vmem:[%s3289_s1 + $0x60] sm:$0xff]  ;;  %v413_v22 = vld [vmem:[%s3289_s1 + $0x70] sm:$0xff]  ;;  %v416_v23 = vld [vmem:[%s3289_s1 + $0x88] sm:$0xff]  ;;  %s2939_s17 = scalar_lea.vmem %s3288_s0, %s1831_s28  ;;  %s1787_s28 = sshll.u32 %s356_s24, 7 }
  0x57   : > { %2212 = vmatpush1.bf16.msra.mxu1 %v2211_v12  ;;  %v2175_v21 = vpack.c.bf16 %v411_v19, %v407_v18  ;;  %v420_v24 = vld [vmem:[%s3289_s1 + $0xa8] sm:$0xff]  ;;  %2174 = vmatprep.subr.bf16.mxu0 %v2173_v16  ;;  %v2215_v25 = vpack.c.bf16 %v413_v22, %v409_v20  ;;  %v418_v27 = vld [vmem:[%s3289_s1 + $0x98] sm:$0xff]  ;;  %v415_v29 = vld [vmem:[%s3289_s1 + $0x80] sm:$0xff]  ;;  %s3218_s21 = scalar_lea.vmem [#allocation7], %s1787_s28 }
  0x58   : > { %2214 = vmatprep.subr.bf16.mxu1 %v2213_v17  ;;  %v2177_v26 = vpack.c.bf16 %v420_v24, %v416_v23  ;;  %v422_v28 = vld [vmem:[%s3289_s1 + $0xb8] sm:$0xff]  ;;  %v419_v31 = vld [vmem:[%s3289_s1 + $0xa0] sm:$0xff]  ;;  %v417_v32 = vld [vmem:[%s3289_s1 + $0x90] sm:$0xff]  ;;  %s1695_s14 = sshll.u32 %s3218_s21, 4  ;;  %s3241_s14 = int_to_ptr.vmem [resolvable:$true] %s1695_s14 }
  0x59   : > { %v2217_v30 = vpack.c.bf16 %v422_v28, %v418_v27  ;;  %v421_v33 = vld [vmem:[%s3289_s1 + $0xb0] sm:$0xff]  ;;  %v2179_v34 = vpack.c.bf16 %v419_v31, %v415_v29  ;;  %v424_v35 = vld [vmem:[%s3289_s1 + $0xc8] sm:$0xff]  ;;  %v426_v37 = vld [vmem:[%s3289_s1 + $0xd8] sm:$0xff]  ;;  %s2497_s13 = scalar_lea.vmem %s3241_s14, 2048 }
  0x5a   : > { %2176 = vmatpush1.bf16.msra.mxu0 %v2175_v21  ;;  %v428_v36 = vld [vmem:[%s3289_s1 + $0xe8] sm:$0xff]  ;;  %v2219_v38 = vpack.c.bf16 %v421_v33, %v417_v32  ;;  %v430_v40 = vld [vmem:[%s3289_s1 + $0xf8] sm:$0xff]  ;;  %v423_v41 = vld [vmem:[%s3289_s1 + $0xc0] sm:$0xff]  ;;  %p2498_p10 = scmp.ne.s32.totalorder %s3241_s14, %s2497_s13 }
  0x5b   : > { %2216 = vmatpush1.bf16.msra.mxu1 %v2215_v25  ;;  %2178 = vmatprep.subr.bf16.mxu0 %v2177_v26  ;;  %v2181_v39 = vpack.c.bf16 %v428_v36, %v424_v35  ;;  %v427_v42 = vld [vmem:[%s3289_s1 + $0xe0] sm:$0xff]  ;;  %v2221_v43 = vpack.c.bf16 %v430_v40, %v426_v37  ;;  %v425_v44 = vld [vmem:[%s3289_s1 + $0xd0] sm:$0xff]  ;;  %v432_v46 = vld [vmem:[%s3289_s1 + $0x108] sm:$0xff] }
  0x5c   : > { %2218 = vmatprep.subr.bf16.mxu1 %v2217_v30  ;;  %v429_v45 = vld [vmem:[%s3289_s1 + $0xf0] sm:$0xff]  ;;  %v436_v47 = vld [vmem:[%s3289_s1 + $0x128] sm:$0xff]  ;;  %v434_v48 = vld [vmem:[%s3289_s1 + $0x118] sm:$0xff]  ;;  %v2183_v50 = vpack.c.bf16 %v427_v42, %v423_v41  ;;  %p2499_p2 = pnand %p2498_p10, %p3317_p1 }
  0x5d   : > { %v438_v49 = vld [vmem:[%s3289_s1 + $0x138] sm:$0xff]  ;;  %v2223_v51 = vpack.c.bf16 %v429_v45, %v425_v44  ;;  %v2185_v52 = vpack.c.bf16 %v436_v47, %v432_v46  ;;  %v431_v53 = vld [vmem:[%s3289_s1 + $0x100] sm:$0xff]  ;;  %v433_v55 = vld [vmem:[%s3289_s1 + $0x110] sm:$0xff] }
  0x5e   : > { %2180 = vmatpush1.bf16.msra.mxu0 %v2179_v34  ;;  %v435_v54 = vld [vmem:[%s3289_s1 + $0x120] sm:$0xff]  ;;  %v2225_v56 = vpack.c.bf16 %v438_v49, %v434_v48  ;;  %v437_v57 = vld [vmem:[%s3289_s1 + $0x130] sm:$0xff]  ;;  %v440_v58 = vld [vmem:[%s3289_s1 + $0x148] sm:$0xff]  ;;  %p2500_p3 = pneg %p2499_p2 }
  0x5f   : > { %2220 = vmatpush1.bf16.msra.mxu1 %v2219_v38  ;;  %2182 = vmatprep.subr.bf16.mxu0 %v2181_v39  ;;  %v444_v59 = vld [vmem:[%s3289_s1 + $0x168] sm:$0xff]  ;;  %v442_v60 = vld [vmem:[%s3289_s1 + $0x158] sm:$0xff]  ;;  %v2187_v62 = vpack.c.bf16 %v435_v54, %v431_v53  ;;  %v2227_v63 = vpack.c.bf16 %v437_v57, %v433_v55  ;;  %v439_v1 = vld [vmem:[%s3289_s1 + $0x140] sm:$0xff] }
  0x60   : > { %2222 = vmatprep.subr.bf16.mxu1 %v2221_v43  ;;  %v446_v61 = vld [vmem:[%s3289_s1 + $0x178] sm:$0xff]  ;;  %v2189_v0 = vpack.c.bf16 %v444_v59, %v440_v58  ;;  %v443_v2 = vld [vmem:[%s3289_s1 + $0x160] sm:$0xff]  ;;  %v441_v3 = vld [vmem:[%s3289_s1 + $0x150] sm:$0xff] }
  0x61   : > { %v2229_v4 = vpack.c.bf16 %v446_v61, %v442_v60  ;;  %v445_v5 = vld [vmem:[%s3289_s1 + $0x170] sm:$0xff]  ;;  %v448_v6 = vld [vmem:[%s3289_s1 + $0x188] sm:$0xff]  ;;  %v450_v8 = vld [vmem:[%s3289_s1 + $0x198] sm:$0xff]  ;;  %v2191_v10 = vpack.c.bf16 %v443_v2, %v439_v1 }
  0x62   : > { %2184 = vmatpush1.bf16.msra.mxu0 %v2183_v50  ;;  %v452_v7 = vld [vmem:[%s3289_s1 + $0x1a8] sm:$0xff]  ;;  %v454_v9 = vld [vmem:[%s3289_s1 + $0x1b8] sm:$0xff]  ;;  %v2231_v11 = vpack.c.bf16 %v445_v5, %v441_v3  ;;  %v447_v13 = vld [vmem:[%s3289_s1 + $0x180] sm:$0xff] }
  0x63   : > { %2224 = vmatpush1.bf16.msra.mxu1 %v2223_v51  ;;  %2186 = vmatprep.subr.bf16.mxu0 %v2185_v52  ;;  %v2193_v12 = vpack.c.bf16 %v452_v7, %v448_v6  ;;  %v451_v14 = vld [vmem:[%s3289_s1 + $0x1a0] sm:$0xff]  ;;  %v449_v15 = vld [vmem:[%s3289_s1 + $0x190] sm:$0xff]  ;;  %v2233_v16 = vpack.c.bf16 %v454_v9, %v450_v8  ;;  %v456_v18 = vld [vmem:[%s3289_s1 + $0x1c8] sm:$0xff] }
  0x64   : > { %2226 = vmatprep.subr.bf16.mxu1 %v2225_v56  ;;  %v453_v17 = vld [vmem:[%s3289_s1 + $0x1b0] sm:$0xff]  ;;  %v460_v19 = vld [vmem:[%s3289_s1 + $0x1e8] sm:$0xff]  ;;  %v458_v20 = vld [vmem:[%s3289_s1 + $0x1d8] sm:$0xff]  ;;  %v2195_v22 = vpack.c.bf16 %v451_v14, %v447_v13 }
  0x65   : > { %v462_v21 = vld [vmem:[%s3289_s1 + $0x1f8] sm:$0xff]  ;;  %v455_v23 = vld [vmem:[%s3289_s1 + $0x1c0] sm:$0xff]  ;;  %v2235_v24 = vpack.c.bf16 %v453_v17, %v449_v15  ;;  %v2197_v25 = vpack.c.bf16 %v460_v19, %v456_v18  ;;  %v457_v27 = vld [vmem:[%s3289_s1 + $0x1d0] sm:$0xff] }
  0x66   : > { %2188 = vmatpush1.bf16.msra.mxu0 %v2187_v62  ;;  %v459_v26 = vld [vmem:[%s3289_s1 + $0x1e0] sm:$0xff]  ;;  %v461_v28 = vld [vmem:[%s3289_s1 + $0x1f0] sm:$0xff]  ;;  %v2237_v29 = vpack.c.bf16 %v462_v21, %v458_v20  ;;  %v464_v30 = vld [vmem:[%s3289_s1 + $0x208] sm:$0xff] }
  0x67   : > { %2228 = vmatpush1.bf16.msra.mxu1 %v2227_v63  ;;  %2190 = vmatprep.subr.bf16.mxu0 %v2189_v0  ;;  %v468_v31 = vld [vmem:[%s3289_s1 + $0x228] sm:$0xff]  ;;  %v466_v33 = vld [vmem:[%s3289_s1 + $0x218] sm:$0xff]  ;;  %v2199_v35 = vpack.c.bf16 %v459_v26, %v455_v23  ;;  %v2239_v36 = vpack.c.bf16 %v461_v28, %v457_v27  ;;  %v463_v38 = vld [vmem:[%s3289_s1 + $0x200] sm:$0xff] }
  0x68   : > { %2230 = vmatprep.subr.bf16.mxu1 %v2229_v4  ;;  %v368_v32 = vld [vmem:[%s2939_s17 + $0x8] sm:$0xff]  ;;  %v470_v34 = vld [vmem:[%s3289_s1 + $0x238] sm:$0xff]  ;;  %v2201_v37 = vpack.c.bf16 %v468_v31, %v464_v30  ;;  %v467_v39 = vld [vmem:[%s3289_s1 + $0x220] sm:$0xff] }
  0x69   : > { %1791 = vmatprep.mubr.msk.f32.mxu0 %vm501_vm0, %v368_v32  ;;  %1807 = vmatprep.mubr.msk.f32.mxu1 %vm501_vm0, %v368_v32  ;;  %v465_v40 = vld [vmem:[%s3289_s1 + $0x210] sm:$0xff]  ;;  %v2241_v41 = vpack.c.bf16 %v470_v34, %v466_v33  ;;  %v472_v43 = vld [vmem:[%s3289_s1 + $0x248] sm:$0xff]  ;;  %v474_v45 = vld [vmem:[%s3289_s1 + $0x258] sm:$0xff]  ;;  %v2203_v47 = vpack.c.bf16 %v467_v39, %v463_v38 }
  0x6a   : > { %2192 = vmatpush1.bf16.msra.mxu0 %v2191_v10  ;;  %v469_v42 = vld [vmem:[%s3289_s1 + $0x230] sm:$0xff]  ;;  %v476_v44 = vld [vmem:[%s3289_s1 + $0x268] sm:$0xff]  ;;  %v478_v46 = vld [vmem:[%s3289_s1 + $0x278] sm:$0xff] }
  0x6b   : > { %2232 = vmatpush1.bf16.msra.mxu1 %v2231_v11  ;;  %2194 = vmatprep.subr.bf16.mxu0 %v2193_v12  ;;  %v2243_v48 = vpack.c.bf16 %v469_v42, %v465_v40  ;;  %v2205_v49 = vpack.c.bf16 %v476_v44, %v472_v43  ;;  %v471_v50 = vld [vmem:[%s3289_s1 + $0x240] sm:$0xff]  ;;  %v2245_v52 = vpack.c.bf16 %v478_v46, %v474_v45  ;;  %v473_v53 = vld [vmem:[%s3289_s1 + $0x250] sm:$0xff]  ;;  %v953_v58 = vld [vmem:[#allocation2 + $0x88] sm:$0xff] }
  0x6c   : > { %2234 = vmatprep.subr.bf16.mxu1 %v2233_v16  ;;  %v475_v51 = vld [vmem:[%s3289_s1 + $0x260] sm:$0xff]  ;;  %v477_v54 = vld [vmem:[%s3289_s1 + $0x270] sm:$0xff]  ;;  %v937_v61 = vld [vmem:[#allocation2 + $0x8] sm:$0xff] }
  0x6d   : > { %v2207_v55 = vpack.c.bf16 %v475_v51, %v471_v50  ;;  %v2247_v56 = vpack.c.bf16 %v477_v54, %v473_v53  ;;  %v952_v57 = vld [vmem:[#allocation2 + $0x80] sm:$0xff]  ;;  %v985_v63 = vld [vmem:[#allocation2 + $0x188] sm:$0xff]  ;;  %v954_v4 = vld [vmem:[#allocation2 + $0x90] sm:$0xff] }
  0x6e   : > { %2196 = vmatpush1.bf16.msra.mxu0 %v2195_v22  ;;  %v2249_v59 = vpack.c.bf16 %v953_v58, %v952_v57  ;;  %v936_v60 = vld [vmem:[#allocation2] sm:$0xff]  ;;  %v969_v1 = vld [vmem:[#allocation2 + $0x108] sm:$0xff]  ;;  %v955_v5 = vld [vmem:[#allocation2 + $0x98] sm:$0xff] }
  0x6f   : > { %2236 = vmatpush1.bf16.msra.mxu1 %v2235_v24  ;;  %2198 = vmatprep.subr.bf16.mxu0 %v2197_v25  ;;  %v984_v62 = vld [vmem:[#allocation2 + $0x180] sm:$0xff]  ;;  %v370_v6 = vld [vmem:[%s2939_s17 + $0x18] sm:$0xff]  ;;  %v2251_v7 = vpack.c.bf16 %v937_v61, %v936_v60  ;;  %v986_v8 = vld [vmem:[#allocation2 + $0x190] sm:$0xff]  ;;  %v2253_v11 = vpack.c.bf16 %v955_v5, %v954_v4 }
  0x70   : > { %2238 = vmatprep.subr.bf16.mxu1 %v2237_v29  ;;  %v968_v0 = vld [vmem:[#allocation2 + $0x100] sm:$0xff]  ;;  %v2281_v3 = vpack.c.bf16 %v985_v63, %v984_v62  ;;  %v987_v9 = vld [vmem:[#allocation2 + $0x198] sm:$0xff]  ;;  %v938_v12 = vld [vmem:[#allocation2 + $0x10] sm:$0xff] }
  0x71   : > { %v367_v2 = vld [vmem:[%s2939_s17] sm:$0xff]  ;;  %v2283_v10 = vpack.c.bf16 %v969_v1, %v968_v0  ;;  %v939_v13 = vld [vmem:[#allocation2 + $0x18] sm:$0xff]  ;;  %v970_v14 = vld [vmem:[#allocation2 + $0x110] sm:$0xff]  ;;  %v2285_v15 = vpack.c.bf16 %v987_v9, %v986_v8 }
  0x72   : > { %2200 = vmatpush1.bf16.msra.mxu0 %v2199_v35  ;;  %v971_v16 = vld [vmem:[#allocation2 + $0x118] sm:$0xff]  ;;  %v956_v17 = vld [vmem:[#allocation2 + $0xa0] sm:$0xff]  ;;  %v957_v18 = vld [vmem:[#allocation2 + $0xa8] sm:$0xff]  ;;  %v2255_v23 = vpack.c.bf16 %v939_v13, %v938_v12 }
  0x73   : > { %2240 = vmatpush1.bf16.msra.mxu1 %v2239_v36  ;;  %2202 = vmatprep.subr.bf16.mxu0 %v2201_v37  ;;  %v369_v19 = vld [vmem:[%s2939_s17 + $0x10] sm:$0xff]  ;;  %v988_v20 = vld [vmem:[#allocation2 + $0x1a0] sm:$0xff]  ;;  %v989_v21 = vld [vmem:[#allocation2 + $0x1a8] sm:$0xff]  ;;  %v2287_v24 = vpack.c.bf16 %v971_v16, %v970_v14  ;;  %v2257_v25 = vpack.c.bf16 %v957_v18, %v956_v17 }
  0x74   : > { %2242 = vmatprep.subr.bf16.mxu1 %v2241_v41  ;;  %v372_v22 = vld [vmem:[%s2939_s17 + $0x28] sm:$0xff]  ;;  %v940_v26 = vld [vmem:[#allocation2 + $0x20] sm:$0xff]  ;;  %v2289_v29 = vpack.c.bf16 %v989_v21, %v988_v20  ;;  %v958_v31 = vld [vmem:[#allocation2 + $0xb0] sm:$0xff] }
  0x75   : > { %v941_v27 = vld [vmem:[#allocation2 + $0x28] sm:$0xff]  ;;  %v972_v28 = vld [vmem:[#allocation2 + $0x120] sm:$0xff]  ;;  %v959_v32 = vld [vmem:[#allocation2 + $0xb8] sm:$0xff] }
  0x76   : > { %2204 = vmatpush1.bf16.msra.mxu0 %v2203_v47  ;;  %v973_v30 = vld [vmem:[#allocation2 + $0x128] sm:$0xff]  ;;  %v371_v33 = vld [vmem:[%s2939_s17 + $0x20] sm:$0xff]  ;;  %v990_v34 = vld [vmem:[#allocation2 + $0x1b0] sm:$0xff]  ;;  %v2259_v37 = vpack.c.bf16 %v941_v27, %v940_v26  ;;  %v2261_v39 = vpack.c.bf16 %v959_v32, %v958_v31 }
  0x77   : > { %2244 = vmatpush1.bf16.msra.mxu1 %v2243_v48  ;;  %2206 = vmatprep.subr.bf16.mxu0 %v2205_v49  ;;  %v991_v35 = vld [vmem:[#allocation2 + $0x1b8] sm:$0xff]  ;;  %v2291_v38 = vpack.c.bf16 %v973_v30, %v972_v28  ;;  %v942_v40 = vld [vmem:[#allocation2 + $0x30] sm:$0xff]  ;;  %v960_v45 = vld [vmem:[#allocation2 + $0xc0] sm:$0xff] }
  0x78   : > { %2246 = vmatprep.subr.bf16.mxu1 %v2245_v52  ;;  %v374_v36 = vld [vmem:[%s2939_s17 + $0x38] sm:$0xff]  ;;  %v974_v42 = vld [vmem:[#allocation2 + $0x130] sm:$0xff]  ;;  %v2293_v43 = vpack.c.bf16 %v991_v35, %v990_v34  ;;  %v961_v46 = vld [vmem:[#allocation2 + $0xc8] sm:$0xff] }
  0x79   : > { %v943_v41 = vld [vmem:[#allocation2 + $0x38] sm:$0xff]  ;;  %v373_v47 = vld [vmem:[%s2939_s17 + $0x30] sm:$0xff]  ;;  %v992_v48 = vld [vmem:[#allocation2 + $0x1c0] sm:$0xff]  ;;  %v2265_v53 = vpack.c.bf16 %v961_v46, %v960_v45 }
  0x7a   : > { %2208 = vmatpush1.bf16.msra.mxu0 %v2207_v55  ;;  %v975_v44 = vld [vmem:[#allocation2 + $0x138] sm:$0xff]  ;;  %v993_v49 = vld [vmem:[#allocation2 + $0x1c8] sm:$0xff]  ;;  %v2263_v51 = vpack.c.bf16 %v943_v41, %v942_v40  ;;  %v944_v54 = vld [vmem:[#allocation2 + $0x40] sm:$0xff] }
  0x7b   : > { %2248 = vmatpush1.bf16.msra.mxu1 %v2247_v56  ;;  %2250 = vmatprep.subr.bf16.mxu0 %v2249_v59  ;;  %v376_v50 = vld [vmem:[%s2939_s17 + $0x48] sm:$0xff]  ;;  %v2295_v52 = vpack.c.bf16 %v975_v44, %v974_v42  ;;  %v976_v56 = vld [vmem:[#allocation2 + $0x140] sm:$0xff]  ;;  %v2297_v57 = vpack.c.bf16 %v993_v49, %v992_v48  ;;  %v962_v59 = vld [vmem:[#allocation2 + $0xd0] sm:$0xff] }
  0x7c   : > { %2282 = vmatprep.subr.bf16.mxu1 %v2281_v3  ;;  %v945_v55 = vld [vmem:[#allocation2 + $0x48] sm:$0xff]  ;;  %v963_v60 = vld [vmem:[#allocation2 + $0xd8] sm:$0xff]  ;;  %v375_v61 = vld [vmem:[%s2939_s17 + $0x40] sm:$0xff] }
  0x7d   : > { %615 = vmatmul.mubr.f32.vlgmr.msra.gmra.mrb[0].mxu0 %v367_v2  ;;  %v977_v58 = vld [vmem:[#allocation2 + $0x148] sm:$0xff]  ;;  %v994_v62 = vld [vmem:[#allocation2 + $0x1d0] sm:$0xff]  ;;  %v995_v63 = vld [vmem:[#allocation2 + $0x1d8] sm:$0xff]  ;;  %v2267_v1 = vpack.c.bf16 %v945_v55, %v944_v54  ;;  %v2269_v3 = vpack.c.bf16 %v963_v60, %v962_v59  ;;  %v481_v59 = vlaneseq }
  0x7e   : > { %776 = vmatmul.mubr.f32.vlgmr.msra.gmra.mrb[0].mxu1 %v367_v2  ;;  %1792 = vmatprep.mubr.msk.f32.mxu0 %vm501_vm0, %v370_v6  ;;  %v378_v0 = vld [vmem:[%s2939_s17 + $0x58] sm:$0xff]  ;;  %v2299_v2 = vpack.c.bf16 %v977_v58, %v976_v56  ;;  %v946_v4 = vld [vmem:[#allocation2 + $0x50] sm:$0xff]  ;;  %v964_v9 = vld [vmem:[#allocation2 + $0xe0] sm:$0xff] }
  0x7f   : > { %1808 = vmatprep.mubr.msk.f32.mxu1 %vm501_vm0, %v370_v6  ;;  %2252 = vmatpush3.bf16.msra.mxu0 %v2251_v7  ;;  %v947_v5 = vld [vmem:[#allocation2 + $0x58] sm:$0xff]  ;;  %v978_v6 = vld [vmem:[#allocation2 + $0x150] sm:$0xff]  ;;  %v2301_v7 = vpack.c.bf16 %v995_v63, %v994_v62  ;;  %v996_v12 = vld [vmem:[#allocation2 + $0x1e0] sm:$0xff]  ;;  %v482_v60 = vshrl.u32 %v481_v59, 7 }
  0x80   : > { %2284 = vmatpush3.bf16.msra.mxu1 %v2283_v10  ;;  %2254 = vmatprep.subr.bf16.mxu0 %v2253_v11  ;;  %v979_v8 = vld [vmem:[#allocation2 + $0x158] sm:$0xff]  ;;  %v965_v10 = vld [vmem:[#allocation2 + $0xe8] sm:$0xff]  ;;  %v377_v11 = vld [vmem:[%s2939_s17 + $0x50] sm:$0xff] }
  0x81   : > { %621 = vmatmul.mubr.f32.gmra.mrb[2].mxu0 %v369_v19  ;;  %2286 = vmatprep.subr.bf16.mxu1 %v2285_v15  ;;  %v997_v13 = vld [vmem:[#allocation2 + $0x1e8] sm:$0xff]  ;;  %v2271_v15 = vpack.c.bf16 %v947_v5, %v946_v4  ;;  %v2303_v16 = vpack.c.bf16 %v979_v8, %v978_v6  ;;  %v2273_v17 = vpack.c.bf16 %v965_v10, %v964_v9  ;;  %v948_v18 = vld [vmem:[#allocation2 + $0x60] sm:$0xff]  ;;  %v382_v26 = vld [vmem:[%s2939_s17 + $0x78] sm:$0xff]  ;;  %v491_v63 = vsub.s32 2, %v482_v60 }
  0x82   : > { %782 = vmatmul.mubr.f32.gmra.mrb[2].mxu1 %v369_v19  ;;  %1793 = vmatprep.mubr.msk.f32.mxu0 %vm501_vm0, %v372_v22  ;;  %v380_v14 = vld [vmem:[%s2939_s17 + $0x68] sm:$0xff]  ;;  %v980_v20 = vld [vmem:[#allocation2 + $0x160] sm:$0xff]  ;;  %v2305_v21 = vpack.c.bf16 %v997_v13, %v996_v12  ;;  %v950_v30 = vld [vmem:[#allocation2 + $0x70] sm:$0xff] }
  0x83   : > { %1809 = vmatprep.mubr.msk.f32.mxu1 %vm501_vm0, %v372_v22  ;;  %2256 = vmatpush3.bf16.msra.mxu0 %v2255_v23  ;;  %v949_v19 = vld [vmem:[#allocation2 + $0x68] sm:$0xff]  ;;  %v966_v23 = vld [vmem:[#allocation2 + $0xf0] sm:$0xff]  ;;  %v951_v31 = vld [vmem:[#allocation2 + $0x78] sm:$0xff] }
  0x84   : > { %2288 = vmatpush3.bf16.msra.mxu1 %v2287_v24  ;;  %2258 = vmatprep.subr.bf16.mxu0 %v2257_v25  ;;  %v981_v22 = vld [vmem:[#allocation2 + $0x168] sm:$0xff]  ;;  %v967_v24 = vld [vmem:[#allocation2 + $0xf8] sm:$0xff]  ;;  %v379_v25 = vld [vmem:[%s2939_s17 + $0x60] sm:$0xff]  ;;  %v2275_v27 = vpack.c.bf16 %v949_v19, %v948_v18  ;;  %v2279_v34 = vpack.c.bf16 %v951_v31, %v950_v30 }
  0x85   : > { %627 = vmatmul.mubr.f32.gmra.mrb[4].mxu0 %v371_v33  ;;  %2290 = vmatprep.subr.bf16.mxu1 %v2289_v29  ;;  %v2307_v28 = vpack.c.bf16 %v981_v22, %v980_v20  ;;  %v2277_v29 = vpack.c.bf16 %v967_v24, %v966_v23  ;;  %v381_v32 = vld [vmem:[%s2939_s17 + $0x70] sm:$0xff]  ;;  %v383_v35 = vld [vmem:[%s2939_s17 + $0x80] sm:$0xff]  ;;  %v390_v40 = vld [vmem:[%s2939_s17 + $0xb8] sm:$0xff] }
  0x86   : > { %788 = vmatmul.mubr.f32.gmra.mrb[4].mxu1 %v371_v33  ;;  %1794 = vmatprep.mubr.msk.f32.mxu0 %vm501_vm0, %v374_v36  ;;  %v384_v33 = vld [vmem:[%s2939_s17 + $0x88] sm:$0xff]  ;;  %v389_v41 = vld [vmem:[%s2939_s17 + $0xb0] sm:$0xff]  ;;  %v394_v44 = vld [vmem:[%s2939_s17 + $0xd8] sm:$0xff] }
  0x87   : > { %1810 = vmatprep.mubr.msk.f32.mxu1 %vm501_vm0, %v374_v36  ;;  %2260 = vmatpush3.bf16.msra.mxu0 %v2259_v37  ;;  %v386_v36 = vld [vmem:[%s2939_s17 + $0x98] sm:$0xff]  ;;  %v385_v37 = vld [vmem:[%s2939_s17 + $0x90] sm:$0xff]  ;;  %v392_v42 = vld [vmem:[%s2939_s17 + $0xc8] sm:$0xff] }
  0x88   : > { %2292 = vmatpush3.bf16.msra.mxu1 %v2291_v38  ;;  %2262 = vmatprep.subr.bf16.mxu0 %v2261_v39  ;;  %v388_v38 = vld [vmem:[%s2939_s17 + $0xa8] sm:$0xff]  ;;  %v387_v39 = vld [vmem:[%s2939_s17 + $0xa0] sm:$0xff]  ;;  %v393_v45 = vld [vmem:[%s2939_s17 + $0xd0] sm:$0xff] }
  0x89   : > { %633 = vmatmul.mubr.f32.gmra.mrb[6].mxu0 %v373_v47  ;;  %2294 = vmatprep.subr.bf16.mxu1 %v2293_v43  ;;  %v391_v43 = vld [vmem:[%s2939_s17 + $0xc0] sm:$0xff]  ;;  %v396_v46 = vld [vmem:[%s2939_s17 + $0xe8] sm:$0xff]  ;;  %v398_v48 = vld [vmem:[%s2939_s17 + $0xf8] sm:$0xff] }
  0x8a   : > { %794 = vmatmul.mubr.f32.gmra.mrb[6].mxu1 %v373_v47  ;;  %1795 = vmatprep.mubr.msk.f32.mxu0 %vm501_vm0, %v376_v50  ;;  %v395_v47 = vld [vmem:[%s2939_s17 + $0xe0] sm:$0xff]  ;;  %v397_v49 = vld [vmem:[%s2939_s17 + $0xf0] sm:$0xff]  ;;  %v983_v54 = vld [vmem:[#allocation2 + $0x178] sm:$0xff]  ;;  %s2573_s17 = smov [#allocation7]  }
  0x8b   : > { %1811 = vmatprep.mubr.msk.f32.mxu1 %vm501_vm0, %v376_v50  ;;  %2264 = vmatpush3.bf16.msra.mxu0 %v2263_v51  ;;  %v998_v50 = vld [vmem:[#allocation2 + $0x1f0] sm:$0xff]  ;;  %v999_v51 = vld [vmem:[#allocation2 + $0x1f8] sm:$0xff]  ;;  %v1313_v56 = vld [vmem:[%s3293_s5] sm:$0xff]  ;;  %s2501_s18 = sshll.u32 %s2573_s17, 4  ;;  %s2502_s18 = int_to_ptr.vmem [resolvable:$false] %s2501_s18 }
  0x8c   : > { %2296 = vmatpush3.bf16.msra.mxu1 %v2295_v52  ;;  %2266 = vmatprep.subr.bf16.mxu0 %v2265_v53  ;;  %v2309_v52 = vpack.c.bf16 %v999_v51, %v998_v50  ;;  %v982_v53 = vld [vmem:[#allocation2 + $0x170] sm:$0xff]  ;;  %v479_v62 = vld [vmem:[%s3290_s2] sm:$0xf]  ;;  %v1322_v59 = vld [vmem:[%s3293_s5 + $0x48] sm:$0xff]  ;;  %s2503_s23 = scalar_lea.vmem %s2502_s18, 4096  ;;  %p2504_p4 = scmp.lt.s32.totalorder %s3241_s14, %s2502_s18 }
  0x8d   : > { %639 = vmatmul.mubr.f32.gmra.mrb[8].mxu0 %v375_v61  ;;  %2298 = vmatprep.subr.bf16.mxu1 %v2297_v57  ;;  %v2311_v55 = vpack.c.bf16 %v983_v54, %v982_v53  ;;  %v1314_v57 = vld [vmem:[%s3293_s5 + $0x8] sm:$0xff]  ;;  %v1315_v13 = vld [vmem:[%s3293_s5 + $0x10] sm:$0xff]  ;;  %p2505_p7 = scmp.lt.s32.totalorder %s2503_s23, %s2497_s13 }
  0x8e   : > { %800 = vmatmul.mubr.f32.gmra.mrb[8].mxu1 %v375_v61  ;;  %1796 = vmatprep.mubr.msk.f32.mxu0 %vm501_vm0, %v378_v0  ;;  %v2313_v58 = vpack.c.bf16 %v1314_v57, %v1313_v56  ;;  %v483_v61 = vsub.s32 0, %v482_v60 }
  0x8f   : > { %1812 = vmatprep.mubr.msk.f32.mxu1 %vm501_vm0, %v378_v0  ;;  %2268 = vmatpush3.bf16.msra.mxu0 %v2267_v1  ;;  %v487_v0 = vsub.s32 1, %v482_v60  ;;  %v495_v1 = vsub.s32 3, %v482_v60  ;;  %p2506_p8 = por %p2505_p7, %p2504_p4 }
  0x90   : > { %2300 = vmatpush3.bf16.msra.mxu1 %v2299_v2  ;;  %2270 = vmatprep.subr.bf16.mxu0 %v2269_v3  ;;  %v3074_v2 = vrot.slane %v479_v62, %v483_v61  ;;  %v3076_v3 = vrot.slane %v479_v62, %v491_v63 }
  0x91   : > { %645 = vmatmul.mubr.f32.gmra.mrb[10].mxu0 %v377_v11  ;;  %2302 = vmatprep.subr.bf16.mxu1 %v2301_v7  ;;  %v3078_v4 = vrot.slane %v479_v62, %v487_v0  ;;  %v3080_v5 = vrot.slane %v479_v62, %v495_v1  ;;  %p2507_p11 = pnand %p2506_p8, %p2500_p3 }
  0x92   : > { %806 = vmatmul.mubr.f32.gmra.mrb[10].mxu1 %v377_v11  ;;  %1797 = vmatprep.mubr.msk.f32.mxu0 %vm501_vm0, %v380_v14 }
  0x93   : > { %1813 = vmatprep.mubr.msk.f32.mxu1 %vm501_vm0, %v380_v14  ;;  %2272 = vmatpush3.bf16.msra.mxu0 %v2271_v15  ;;  %v1316_v14 = vld [vmem:[%s3293_s5 + $0x18] sm:$0xff] }
  0x94   : > { %2304 = vmatpush3.bf16.msra.mxu1 %v2303_v16  ;;  %2274 = vmatprep.subr.bf16.mxu0 %v2273_v17  ;;  %v2317_v24 = vpack.c.bf16 %v1316_v14, %v1315_v13 }
  0x95   : > { %651 = vmatmul.mubr.f32.gmra.mrb[12].mxu0 %v379_v25  ;;  %2306 = vmatprep.subr.bf16.mxu1 %v2305_v21 }
  0x96   : > { %812 = vmatmul.mubr.f32.gmra.mrb[12].mxu1 %v379_v25  ;;  %1798 = vmatprep.mubr.msk.f32.mxu0 %vm501_vm0, %v382_v26 }
  0x97   : > { %1814 = vmatprep.mubr.msk.f32.mxu1 %vm501_vm0, %v382_v26  ;;  %2276 = vmatpush3.bf16.msra.mxu0 %v2275_v27 }
  0x98   : > { %2308 = vmatpush3.bf16.msra.mxu1 %v2307_v28  ;;  %2278 = vmatprep.subr.bf16.mxu0 %v2277_v29  ;;  %v1317_v28 = vld [vmem:[%s3293_s5 + $0x20] sm:$0xff]  ;;  %v1318_v29 = vld [vmem:[%s3293_s5 + $0x28] sm:$0xff] }
  0x99   : > { %657 = vmatmul.mubr.f32.gmra.mrb[14].mxu0 %v381_v32  ;;  %2310 = vmatprep.subr.bf16.mxu1 %v2309_v52 }
  0x9a   : > { %818 = vmatmul.mubr.f32.gmra.mrb[14].mxu1 %v381_v32  ;;  %1799 = vmatprep.mubr.msk.f32.mxu0 %vm501_vm0, %v384_v33 }
  0x9b   : > { %1815 = vmatprep.mubr.msk.f32.mxu1 %vm501_vm0, %v384_v33  ;;  %2280 = vmatpush3.bf16.msra.mxu0 %v2279_v34 }
  0x9c   : > { %2312 = vmatpush3.bf16.msra.mxu1 %v2311_v55  ;;  %2314 = vmatprep.subr.bf16.mxu0 %v2313_v58 }
  0x9d   : > { %663 = vmatmul.mubr.f32.gmra.mrb[16].mxu0 %v383_v35 }
  0x9e   : > { %824 = vmatmul.mubr.f32.gmra.mrb[16].mxu1 %v383_v35  ;;  %1800 = vmatprep.mubr.msk.f32.mxu0 %vm501_vm0, %v386_v36 }
  0x9f   : > { %1816 = vmatprep.mubr.msk.f32.mxu1 %vm501_vm0, %v386_v36 }
  0xa1   : > { %669 = vmatmul.mubr.f32.gmra.mrb[18].mxu0 %v385_v37 }
  0xa2   : > { %830 = vmatmul.mubr.f32.gmra.mrb[18].mxu1 %v385_v37  ;;  %1801 = vmatprep.mubr.msk.f32.mxu0 %vm501_vm0, %v388_v38 }
  0xa3   : > { %1817 = vmatprep.mubr.msk.f32.mxu1 %vm501_vm0, %v388_v38 }
  0xa5   : > { %675 = vmatmul.mubr.f32.gmra.mrb[20].mxu0 %v387_v39 }
  0xa6   : > { %836 = vmatmul.mubr.f32.gmra.mrb[20].mxu1 %v387_v39  ;;  %1802 = vmatprep.mubr.msk.f32.mxu0 %vm501_vm0, %v390_v40  ;;  %v2321_v39 = vpack.c.bf16 %v1318_v29, %v1317_v28 }
  0xa7   : > { %1818 = vmatprep.mubr.msk.f32.mxu1 %vm501_vm0, %v390_v40 }
  0xa9   : > { %681 = vmatmul.mubr.f32.gmra.mrb[22].mxu0 %v389_v41 }
  0xaa   : > { %842 = vmatmul.mubr.f32.gmra.mrb[22].mxu1 %v389_v41  ;;  %1803 = vmatprep.mubr.msk.f32.mxu0 %vm501_vm0, %v392_v42 }
  0xab   : > { %1819 = vmatprep.mubr.msk.f32.mxu1 %vm501_vm0, %v392_v42 }
  0xad   : > { %687 = vmatmul.mubr.f32.gmra.mrb[24].mxu0 %v391_v43 }
  0xae   : > { %848 = vmatmul.mubr.f32.gmra.mrb[24].mxu1 %v391_v43  ;;  %1804 = vmatprep.mubr.msk.f32.mxu0 %vm501_vm0, %v394_v44  ;;  %v1319_v43 = vld [vmem:[%s3293_s5 + $0x30] sm:$0xff] }
  0xaf   : > { %1820 = vmatprep.mubr.msk.f32.mxu1 %vm501_vm0, %v394_v44  ;;  %v1320_v44 = vld [vmem:[%s3293_s5 + $0x38] sm:$0xff] }
  0xb0   : > { %v2325_v54 = vpack.c.bf16 %v1320_v44, %v1319_v43 }
  0xb1   : > { %693 = vmatmul.mubr.f32.gmra.mrb[26].mxu0 %v393_v45 }
  0xb2   : > { %854 = vmatmul.mubr.f32.gmra.mrb[26].mxu1 %v393_v45  ;;  %1805 = vmatprep.mubr.msk.f32.mxu0 %vm501_vm0, %v396_v46 }
  0xb3   : > { %1821 = vmatprep.mubr.msk.f32.mxu1 %vm501_vm0, %v396_v46 }
  0xb5   : > { %699 = vmatmul.mubr.f32.gmra.mrb[28].mxu0 %v395_v47 }
  0xb6   : > { %860 = vmatmul.mubr.f32.gmra.mrb[28].mxu1 %v395_v47  ;;  %1806 = vmatprep.mubr.msk.f32.mxu0 %vm501_vm0, %v398_v48 }
  0xb7   : > { %1822 = vmatprep.mubr.msk.f32.mxu1 %vm501_vm0, %v398_v48 }
  0xb9   : > { %705 = vmatmul.mubr.f32.gmra.mrb[30].mxu0 %v397_v49 }
  0xba   : > { %866 = vmatmul.mubr.f32.gmra.mrb[30].mxu1 %v397_v49 }
 0x150   : > { %v616_v6 = vpop.f32.mrb[0].mxu0 }
 0x151   : > { %v617_v7 = vadd.f32 %v616_v6, %v3074_v2  ;;  %v777_v8 = vpop.f32.mrb[0].mxu1  ;;  %v618_v9 = vpop.f32.mrb[1].mxu0 }
 0x152   : > { %v778_v10 = vadd.f32 %v777_v8, %v3076_v3  ;;  %v619_v11 = vadd.f32 %v618_v9, %v3078_v4  ;;  %v779_v12 = vpop.f32.mrb[1].mxu1 }
 0x153   : > { %v780_v15 = vadd.f32 %v779_v12, %v3080_v5  ;;  %v872_v19 = vmax.f32 %v617_v7, 0.0 }
 0x154   : > { %v874_v16 = vmax.f32 %v778_v10, 0.0  ;;  %v873_v17 = vmax.f32 %v619_v11, 0.0  ;;  %v622_v18 = vpop.f32.mrb[2].mxu0 }
 0x155   : > { %v875_v20 = vmax.f32 %v780_v15, 0.0  ;;  %v623_v21 = vadd.f32 %v622_v18, %v3074_v2  ;;  %v783_v22 = vpop.f32.mrb[2].mxu1  ;;  %v624_v23 = vpop.f32.mrb[3].mxu0 }
 0x156   : > { %v784_v25 = vadd.f32 %v783_v22, %v3076_v3  ;;  %v625_v26 = vadd.f32 %v624_v23, %v3078_v4  ;;  %v785_v27 = vpop.f32.mrb[3].mxu1  ;;  %1071 = vmatprep.mubr.f32.mxu0 %v873_v17 }
 0x157   : > { %v786_v30 = vadd.f32 %v785_v27, %v3080_v5  ;;  %1216 = vmatprep.mubr.f32.mxu1 %v875_v20  ;;  %1072 = vmatmul.mubr.f32.vlgmr.msra.gmra.mrb[32].mxu0 %v872_v19  ;;  %v876_v34 = vmax.f32 %v623_v21, 0.0 }
 0x158   : > { %v878_v31 = vmax.f32 %v784_v25, 0.0  ;;  %v877_v32 = vmax.f32 %v625_v26, 0.0  ;;  %1217 = vmatmul.mubr.f32.vlgmr.msra.gmra.mrb[32].mxu1 %v874_v16  ;;  %v628_v33 = vpop.f32.mrb[4].mxu0  ;;  %2316 = vmatpush3.bf16.msra.mxu0 %v2313_v58  ;;  %v1321_v58 = vld [vmem:[%s3293_s5 + $0x40] sm:$0xff] }
 0x159   : > { %v879_v35 = vmax.f32 %v786_v30, 0.0  ;;  %v629_v36 = vadd.f32 %v628_v33, %v3074_v2  ;;  %v789_v37 = vpop.f32.mrb[4].mxu1  ;;  %v630_v38 = vpop.f32.mrb[5].mxu0  ;;  %2318 = vmatprep.subr.bf16.mxu0 %v2317_v24  ;;  %v2329_v9 = vpack.c.bf16 %v1322_v59, %v1321_v58 }
 0x15a   : > { %v790_v40 = vadd.f32 %v789_v37, %v3076_v3  ;;  %v631_v41 = vadd.f32 %v630_v38, %v3078_v4  ;;  %v791_v42 = vpop.f32.mrb[5].mxu1  ;;  %1076 = vmatprep.mubr.f32.mxu0 %v877_v32 }
 0x15b   : > { %v792_v45 = vadd.f32 %v791_v42, %v3080_v5  ;;  %1221 = vmatprep.mubr.f32.mxu1 %v879_v35  ;;  %1077 = vmatmul.mubr.f32.gmra.mrb[34].mxu0 %v876_v34  ;;  %v880_v49 = vmax.f32 %v629_v36, 0.0 }
 0x15c   : > { %v882_v46 = vmax.f32 %v790_v40, 0.0  ;;  %v881_v47 = vmax.f32 %v631_v41, 0.0  ;;  %1222 = vmatmul.mubr.f32.gmra.mrb[34].mxu1 %v878_v31  ;;  %v634_v48 = vpop.f32.mrb[6].mxu0  ;;  %2320 = vmatpush3.bf16.msra.mxu0 %v2317_v24 }
 0x15d   : > { %v883_v50 = vmax.f32 %v792_v45, 0.0  ;;  %v635_v51 = vadd.f32 %v634_v48, %v3074_v2  ;;  %v795_v52 = vpop.f32.mrb[6].mxu1  ;;  %v636_v53 = vpop.f32.mrb[7].mxu0  ;;  %2322 = vmatprep.subr.bf16.mxu0 %v2321_v39 }
 0x15e   : > { %v796_v55 = vadd.f32 %v795_v52, %v3076_v3  ;;  %v637_v56 = vadd.f32 %v636_v53, %v3078_v4  ;;  %v797_v57 = vpop.f32.mrb[7].mxu1  ;;  %1081 = vmatprep.mubr.f32.mxu0 %v881_v47 }
 0x15f   : > { %v798_v60 = vadd.f32 %v797_v57, %v3080_v5  ;;  %1226 = vmatprep.mubr.f32.mxu1 %v883_v50  ;;  %1082 = vmatmul.mubr.f32.gmra.mrb[36].mxu0 %v880_v49  ;;  %v884_v0 = vmax.f32 %v635_v51, 0.0 }
 0x160   : > { %v886_v61 = vmax.f32 %v796_v55, 0.0  ;;  %v885_v62 = vmax.f32 %v637_v56, 0.0  ;;  %1227 = vmatmul.mubr.f32.gmra.mrb[36].mxu1 %v882_v46  ;;  %v640_v63 = vpop.f32.mrb[8].mxu0  ;;  %2324 = vmatpush3.bf16.msra.mxu0 %v2321_v39 }
 0x161   : > { %v887_v1 = vmax.f32 %v798_v60, 0.0  ;;  %v641_v6 = vadd.f32 %v640_v63, %v3074_v2  ;;  %v801_v7 = vpop.f32.mrb[8].mxu1  ;;  %v642_v8 = vpop.f32.mrb[9].mxu0  ;;  %2326 = vmatprep.subr.bf16.mxu0 %v2325_v54 }
 0x162   : > { %v802_v10 = vadd.f32 %v801_v7, %v3076_v3  ;;  %v643_v11 = vadd.f32 %v642_v8, %v3078_v4  ;;  %v803_v12 = vpop.f32.mrb[9].mxu1  ;;  %1086 = vmatprep.mubr.f32.mxu0 %v885_v62 }
 0x163   : > { %v804_v13 = vadd.f32 %v803_v12, %v3080_v5  ;;  %1231 = vmatprep.mubr.f32.mxu1 %v887_v1  ;;  %1087 = vmatmul.mubr.f32.gmra.mrb[38].mxu0 %v884_v0  ;;  %v888_v17 = vmax.f32 %v641_v6, 0.0 }
 0x164   : > { %v890_v14 = vmax.f32 %v802_v10, 0.0  ;;  %v889_v15 = vmax.f32 %v643_v11, 0.0  ;;  %1232 = vmatmul.mubr.f32.gmra.mrb[38].mxu1 %v886_v61  ;;  %v646_v16 = vpop.f32.mrb[10].mxu0  ;;  %2328 = vmatpush3.bf16.msra.mxu0 %v2325_v54 }
 0x165   : > { %v891_v18 = vmax.f32 %v804_v13, 0.0  ;;  %v647_v19 = vadd.f32 %v646_v16, %v3074_v2  ;;  %v807_v20 = vpop.f32.mrb[10].mxu1  ;;  %v648_v21 = vpop.f32.mrb[11].mxu0  ;;  %2330 = vmatprep.subr.bf16.mxu0 %v2329_v9 }
 0x166   : > { %v808_v22 = vadd.f32 %v807_v20, %v3076_v3  ;;  %v649_v23 = vadd.f32 %v648_v21, %v3078_v4  ;;  %v809_v24 = vpop.f32.mrb[11].mxu1  ;;  %1091 = vmatprep.mubr.f32.mxu0 %v889_v15 }
 0x167   : > { %v810_v25 = vadd.f32 %v809_v24, %v3080_v5  ;;  %1236 = vmatprep.mubr.f32.mxu1 %v891_v18  ;;  %1092 = vmatmul.mubr.f32.gmra.mrb[40].mxu0 %v888_v17  ;;  %v892_v29 = vmax.f32 %v647_v19, 0.0 }
 0x168   : > { %v894_v26 = vmax.f32 %v808_v22, 0.0  ;;  %v893_v27 = vmax.f32 %v649_v23, 0.0  ;;  %1237 = vmatmul.mubr.f32.gmra.mrb[40].mxu1 %v890_v14  ;;  %v652_v28 = vpop.f32.mrb[12].mxu0  ;;  %2332 = vmatpush3.bf16.msra.mxu0 %v2329_v9 }
 0x169   : > { %v895_v30 = vmax.f32 %v810_v25, 0.0  ;;  %v653_v31 = vadd.f32 %v652_v28, %v3074_v2  ;;  %v813_v32 = vpop.f32.mrb[12].mxu1  ;;  %v654_v33 = vpop.f32.mrb[13].mxu0 }
 0x16a   : > { %v814_v34 = vadd.f32 %v813_v32, %v3076_v3  ;;  %v655_v35 = vadd.f32 %v654_v33, %v3078_v4  ;;  %v815_v36 = vpop.f32.mrb[13].mxu1  ;;  %1096 = vmatprep.mubr.f32.mxu0 %v893_v27 }
 0x16b   : > { %v816_v37 = vadd.f32 %v815_v36, %v3080_v5  ;;  %1241 = vmatprep.mubr.f32.mxu1 %v895_v30  ;;  %1097 = vmatmul.mubr.f32.gmra.mrb[42].mxu0 %v892_v29  ;;  %v896_v41 = vmax.f32 %v653_v31, 0.0 }
 0x16c   : > { %v898_v38 = vmax.f32 %v814_v34, 0.0  ;;  %v897_v39 = vmax.f32 %v655_v35, 0.0  ;;  %1242 = vmatmul.mubr.f32.gmra.mrb[42].mxu1 %v894_v26  ;;  %v658_v40 = vpop.f32.mrb[14].mxu0 }
 0x16d   : > { %v899_v42 = vmax.f32 %v816_v37, 0.0  ;;  %v659_v43 = vadd.f32 %v658_v40, %v3074_v2  ;;  %v819_v44 = vpop.f32.mrb[14].mxu1  ;;  %v660_v45 = vpop.f32.mrb[15].mxu0 }
 0x16e   : > { %v820_v46 = vadd.f32 %v819_v44, %v3076_v3  ;;  %v661_v47 = vadd.f32 %v660_v45, %v3078_v4  ;;  %v821_v48 = vpop.f32.mrb[15].mxu1  ;;  %1101 = vmatprep.mubr.f32.mxu0 %v897_v39 }
 0x16f   : > { %v822_v49 = vadd.f32 %v821_v48, %v3080_v5  ;;  %1246 = vmatprep.mubr.f32.mxu1 %v899_v42  ;;  %1102 = vmatmul.mubr.f32.gmra.mrb[44].mxu0 %v896_v41  ;;  %v900_v53 = vmax.f32 %v659_v43, 0.0 }
 0x170   : > { %v902_v50 = vmax.f32 %v820_v46, 0.0  ;;  %v901_v51 = vmax.f32 %v661_v47, 0.0  ;;  %1247 = vmatmul.mubr.f32.gmra.mrb[44].mxu1 %v898_v38  ;;  %v664_v52 = vpop.f32.mrb[16].mxu0 }
 0x171   : > { %v903_v54 = vmax.f32 %v822_v49, 0.0  ;;  %v665_v55 = vadd.f32 %v664_v52, %v3074_v2  ;;  %v825_v56 = vpop.f32.mrb[16].mxu1  ;;  %v666_v57 = vpop.f32.mrb[17].mxu0 }
 0x172   : > { %v826_v58 = vadd.f32 %v825_v56, %v3076_v3  ;;  %v667_v59 = vadd.f32 %v666_v57, %v3078_v4  ;;  %v827_v60 = vpop.f32.mrb[17].mxu1  ;;  %1106 = vmatprep.mubr.f32.mxu0 %v901_v51 }
 0x173   : > { %v828_v61 = vadd.f32 %v827_v60, %v3080_v5  ;;  %1251 = vmatprep.mubr.f32.mxu1 %v903_v54  ;;  %1107 = vmatmul.mubr.f32.gmra.mrb[46].mxu0 %v900_v53  ;;  %v904_v1 = vmax.f32 %v665_v55, 0.0 }
 0x174   : > { %v906_v62 = vmax.f32 %v826_v58, 0.0  ;;  %v905_v63 = vmax.f32 %v667_v59, 0.0  ;;  %1252 = vmatmul.mubr.f32.gmra.mrb[46].mxu1 %v902_v50  ;;  %v670_v0 = vpop.f32.mrb[18].mxu0 }
 0x175   : > { %v907_v6 = vmax.f32 %v828_v61, 0.0  ;;  %v671_v7 = vadd.f32 %v670_v0, %v3074_v2  ;;  %v831_v8 = vpop.f32.mrb[18].mxu1  ;;  %v672_v9 = vpop.f32.mrb[19].mxu0 }
 0x176   : > { %v832_v10 = vadd.f32 %v831_v8, %v3076_v3  ;;  %v673_v11 = vadd.f32 %v672_v9, %v3078_v4  ;;  %v833_v12 = vpop.f32.mrb[19].mxu1  ;;  %1111 = vmatprep.mubr.f32.mxu0 %v905_v63 }
 0x177   : > { %v834_v13 = vadd.f32 %v833_v12, %v3080_v5  ;;  %1256 = vmatprep.mubr.f32.mxu1 %v907_v6  ;;  %1112 = vmatmul.mubr.f32.gmra.mrb[48].mxu0 %v904_v1  ;;  %v908_v17 = vmax.f32 %v671_v7, 0.0 }
 0x178   : > { %v910_v14 = vmax.f32 %v832_v10, 0.0  ;;  %v909_v15 = vmax.f32 %v673_v11, 0.0  ;;  %1257 = vmatmul.mubr.f32.gmra.mrb[48].mxu1 %v906_v62  ;;  %v676_v16 = vpop.f32.mrb[20].mxu0 }
 0x179   : > { %v911_v18 = vmax.f32 %v834_v13, 0.0  ;;  %v677_v19 = vadd.f32 %v676_v16, %v3074_v2  ;;  %v837_v20 = vpop.f32.mrb[20].mxu1  ;;  %v678_v21 = vpop.f32.mrb[21].mxu0 }
 0x17a   : > { %v838_v22 = vadd.f32 %v837_v20, %v3076_v3  ;;  %v679_v23 = vadd.f32 %v678_v21, %v3078_v4  ;;  %v839_v24 = vpop.f32.mrb[21].mxu1  ;;  %1116 = vmatprep.mubr.f32.mxu0 %v909_v15 }
 0x17b   : > { %v840_v25 = vadd.f32 %v839_v24, %v3080_v5  ;;  %1261 = vmatprep.mubr.f32.mxu1 %v911_v18  ;;  %1117 = vmatmul.mubr.f32.gmra.mrb[50].mxu0 %v908_v17  ;;  %v912_v29 = vmax.f32 %v677_v19, 0.0 }
 0x17c   : > { %v914_v26 = vmax.f32 %v838_v22, 0.0  ;;  %v913_v27 = vmax.f32 %v679_v23, 0.0  ;;  %1262 = vmatmul.mubr.f32.gmra.mrb[50].mxu1 %v910_v14  ;;  %v682_v28 = vpop.f32.mrb[22].mxu0 }
 0x17d   : > { %v915_v30 = vmax.f32 %v840_v25, 0.0  ;;  %v683_v31 = vadd.f32 %v682_v28, %v3074_v2  ;;  %v843_v32 = vpop.f32.mrb[22].mxu1  ;;  %v684_v33 = vpop.f32.mrb[23].mxu0 }
 0x17e   : > { %v844_v34 = vadd.f32 %v843_v32, %v3076_v3  ;;  %v685_v35 = vadd.f32 %v684_v33, %v3078_v4  ;;  %v845_v36 = vpop.f32.mrb[23].mxu1  ;;  %1121 = vmatprep.mubr.f32.mxu0 %v913_v27  ;;  %v1327_v32 = vld [vmem:[%s3293_s5 + $0x70] sm:$0xff]  ;;  %v1328_v33 = vld [vmem:[%s3293_s5 + $0x78] sm:$0xff] }
 0x17f   : > { %v846_v37 = vadd.f32 %v845_v36, %v3080_v5  ;;  %1266 = vmatprep.mubr.f32.mxu1 %v915_v30  ;;  %1122 = vmatmul.mubr.f32.gmra.mrb[52].mxu0 %v912_v29  ;;  %v916_v41 = vmax.f32 %v683_v31, 0.0  ;;  %v1326_v30 = vld [vmem:[%s3293_s5 + $0x68] sm:$0xff] }
 0x180   : > { %v918_v38 = vmax.f32 %v844_v34, 0.0  ;;  %v917_v39 = vmax.f32 %v685_v35, 0.0  ;;  %1267 = vmatmul.mubr.f32.gmra.mrb[52].mxu1 %v914_v26  ;;  %v688_v40 = vpop.f32.mrb[24].mxu0  ;;  %v2341_v34 = vpack.c.bf16 %v1328_v33, %v1327_v32  ;;  %v1497_v35 = vld [vmem:[#allocation5] sm:$0xff]  ;;  %v1498_v36 = vld [vmem:[#allocation5 + $0x8] sm:$0xff] }
 0x181   : > { %v919_v42 = vmax.f32 %v846_v37, 0.0  ;;  %v689_v43 = vadd.f32 %v688_v40, %v3074_v2  ;;  %v849_v44 = vpop.f32.mrb[24].mxu1  ;;  %v690_v45 = vpop.f32.mrb[25].mxu0  ;;  %v1499_v37 = vld [vmem:[#allocation5 + $0x10] sm:$0xff] }
 0x182   : > { %v850_v46 = vadd.f32 %v849_v44, %v3076_v3  ;;  %v691_v47 = vadd.f32 %v690_v45, %v3078_v4  ;;  %v851_v48 = vpop.f32.mrb[25].mxu1  ;;  %1126 = vmatprep.mubr.f32.mxu0 %v917_v39  ;;  %v1500_v39 = vld [vmem:[#allocation5 + $0x18] sm:$0xff]  ;;  %v1503_v44 = vld [vmem:[#allocation5 + $0x30] sm:$0xff] }
 0x183   : > { %v852_v49 = vadd.f32 %v851_v48, %v3080_v5  ;;  %1271 = vmatprep.mubr.f32.mxu1 %v919_v42  ;;  %1127 = vmatmul.mubr.f32.gmra.mrb[54].mxu0 %v916_v41  ;;  %v920_v53 = vmax.f32 %v689_v43, 0.0  ;;  %v2349_v40 = vpack.c.bf16 %v1500_v39, %v1499_v37  ;;  %v1501_v41 = vld [vmem:[#allocation5 + $0x20] sm:$0xff]  ;;  %v1502_v42 = vld [vmem:[#allocation5 + $0x28] sm:$0xff]  ;;  %v1504_v45 = vld [vmem:[#allocation5 + $0x38] sm:$0xff] }
 0x184   : > { %v922_v50 = vmax.f32 %v850_v46, 0.0  ;;  %v921_v51 = vmax.f32 %v691_v47, 0.0  ;;  %1272 = vmatmul.mubr.f32.gmra.mrb[54].mxu1 %v918_v38  ;;  %v694_v52 = vpop.f32.mrb[26].mxu0  ;;  %v2345_v38 = vpack.c.bf16 %v1498_v36, %v1497_v35  ;;  %v2353_v43 = vpack.c.bf16 %v1502_v42, %v1501_v41  ;;  %v1505_v47 = vld [vmem:[#allocation5 + $0x40] sm:$0xff]  ;;  %v1506_v48 = vld [vmem:[#allocation5 + $0x48] sm:$0xff] }
 0x185   : > { %v923_v54 = vmax.f32 %v852_v49, 0.0  ;;  %v695_v55 = vadd.f32 %v694_v52, %v3074_v2  ;;  %v855_v56 = vpop.f32.mrb[26].mxu1  ;;  %v696_v57 = vpop.f32.mrb[27].mxu0  ;;  %v2357_v46 = vpack.c.bf16 %v1504_v45, %v1503_v44  ;;  %v2361_v49 = vpack.c.bf16 %v1506_v48, %v1505_v47 }
 0x186   : > { %v856_v58 = vadd.f32 %v855_v56, %v3076_v3  ;;  %v697_v59 = vadd.f32 %v696_v57, %v3078_v4  ;;  %v857_v60 = vpop.f32.mrb[27].mxu1  ;;  %1131 = vmatprep.mubr.f32.mxu0 %v921_v51  ;;  %2346 = vmatprep.subr.bf16.mxu1 %v2345_v38  ;;  %v1508_v51 = vld [vmem:[#allocation5 + $0x58] sm:$0xff] }
 0x187   : > { %v858_v61 = vadd.f32 %v857_v60, %v3080_v5  ;;  %1276 = vmatprep.mubr.f32.mxu1 %v923_v54  ;;  %1132 = vmatmul.mubr.f32.gmra.mrb[56].mxu0 %v920_v53  ;;  %v924_v1 = vmax.f32 %v695_v55, 0.0  ;;  %v1509_v53 = vld [vmem:[#allocation5 + $0x60] sm:$0xff]  ;;  %v1510_v54 = vld [vmem:[#allocation5 + $0x68] sm:$0xff] }
 0x188   : > { %v926_v62 = vmax.f32 %v856_v58, 0.0  ;;  %v925_v63 = vmax.f32 %v697_v59, 0.0  ;;  %1277 = vmatmul.mubr.f32.gmra.mrb[56].mxu1 %v922_v50  ;;  %v700_v0 = vpop.f32.mrb[28].mxu0  ;;  %v1507_v50 = vld [vmem:[#allocation5 + $0x50] sm:$0xff]  ;;  %v2369_v55 = vpack.c.bf16 %v1510_v54, %v1509_v53  ;;  %v3191_v58 = vld [vmem:[%s3292_s4] ss:$0 sm:$0xff] }
 0x189   : > { %v927_v6 = vmax.f32 %v858_v61, 0.0  ;;  %v701_v7 = vadd.f32 %v700_v0, %v3074_v2  ;;  %v861_v8 = vpop.f32.mrb[28].mxu1  ;;  %v702_v9 = vpop.f32.mrb[29].mxu0  ;;  %2348 = vmatpush3.bf16.msra.mxu1 %v2345_v38  ;;  %v2365_v52 = vpack.c.bf16 %v1508_v51, %v1507_v50 }
 0x18a   : > { %v862_v10 = vadd.f32 %v861_v8, %v3076_v3  ;;  %v703_v11 = vadd.f32 %v702_v9, %v3078_v4  ;;  %v863_v12 = vpop.f32.mrb[29].mxu1  ;;  %1136 = vmatprep.mubr.f32.mxu0 %v925_v63  ;;  %2350 = vmatprep.subr.bf16.mxu1 %v2349_v40 }
 0x18b   : > { %v864_v13 = vadd.f32 %v863_v12, %v3080_v5  ;;  %1281 = vmatprep.mubr.f32.mxu1 %v927_v6  ;;  %1137 = vmatmul.mubr.f32.gmra.mrb[58].mxu0 %v924_v1  ;;  %v928_v17 = vmax.f32 %v701_v7, 0.0 }
 0x18c   : > { %v930_v14 = vmax.f32 %v862_v10, 0.0  ;;  %v929_v15 = vmax.f32 %v703_v11, 0.0  ;;  %1282 = vmatmul.mubr.f32.gmra.mrb[58].mxu1 %v926_v62  ;;  %v706_v16 = vpop.f32.mrb[30].mxu0 }
 0x18d   : > { %v931_v18 = vmax.f32 %v864_v13, 0.0  ;;  %v707_v19 = vadd.f32 %v706_v16, %v3074_v2  ;;  %v867_v20 = vpop.f32.mrb[30].mxu1  ;;  %v708_v21 = vpop.f32.mrb[31].mxu0  ;;  %v1323_v2 = vld [vmem:[%s3293_s5 + $0x50] sm:$0xff]  ;;  %2352 = vmatpush3.bf16.msra.mxu1 %v2349_v40 }
 0x18e   : > { %v868_v22 = vadd.f32 %v867_v20, %v3076_v3  ;;  %v709_v23 = vadd.f32 %v708_v21, %v3078_v4  ;;  %v869_v24 = vpop.f32.mrb[31].mxu1  ;;  %1141 = vmatprep.mubr.f32.mxu0 %v929_v15  ;;  %v1324_v3 = vld [vmem:[%s3293_s5 + $0x58] sm:$0xff]  ;;  %2354 = vmatprep.subr.bf16.mxu1 %v2353_v43 }
 0x18f   : > { %v870_v25 = vadd.f32 %v869_v24, %v3080_v5  ;;  %1286 = vmatprep.mubr.f32.mxu1 %v931_v18  ;;  %1142 = vmatmul.mubr.f32.gmra.mrb[60].mxu0 %v928_v17  ;;  %v932_v28 = vmax.f32 %v707_v19, 0.0  ;;  %v2333_v4 = vpack.c.bf16 %v1324_v3, %v1323_v2  ;;  %v1325_v5 = vld [vmem:[%s3293_s5 + $0x60] sm:$0xff] }
 0x190   : > { %v934_v26 = vmax.f32 %v868_v22, 0.0  ;;  %v933_v27 = vmax.f32 %v709_v23, 0.0  ;;  %1287 = vmatmul.mubr.f32.gmra.mrb[60].mxu1 %v930_v14  ;;  %v2337_v31 = vpack.c.bf16 %v1326_v30, %v1325_v5 }
 0x191   : > { %v935_v29 = vmax.f32 %v870_v25, 0.0  ;;  %2334 = vmatprep.subr.bf16.mxu0 %v2333_v4  ;;  %2356 = vmatpush3.bf16.msra.mxu1 %v2353_v43 }
 0x192   : > { %1146 = vmatprep.mubr.f32.mxu0 %v933_v27  ;;  %2336 = vmatpush3.bf16.msra.mxu0 %v2333_v4 }
 0x193   : > { %1291 = vmatprep.mubr.f32.mxu1 %v935_v29  ;;  %1147 = vmatmul.mubr.f32.gmra.mrb[62].mxu0 %v932_v28 }
 0x194   : > { %1292 = vmatmul.mubr.f32.gmra.mrb[62].mxu1 %v934_v26  ;;  %2338 = vmatprep.subr.bf16.mxu0 %v2337_v31 }
 0x195   : > { %2358 = vmatprep.subr.bf16.mxu1 %v2357_v46 }
 0x196   : > { %2340 = vmatpush3.bf16.msra.mxu0 %v2337_v31  ;;  %2360 = vmatpush3.bf16.msra.mxu1 %v2357_v46 }
 0x197   : > { %2342 = vmatprep.subr.bf16.mxu0 %v2341_v34  ;;  %2362 = vmatprep.subr.bf16.mxu1 %v2361_v49 }
 0x19a   : > { %2344 = vmatpush3.bf16.msra.mxu0 %v2341_v34  ;;  %2364 = vmatpush3.bf16.msra.mxu1 %v2361_v49 }
 0x19b   : > { %2366 = vmatprep.subr.bf16.mxu1 %v2365_v52 }
 0x19e   : > { %2368 = vmatpush3.bf16.msra.mxu1 %v2365_v52 }
 0x19f   : > { %2370 = vmatprep.subr.bf16.mxu1 %v2369_v55 }
 0x1a2   : > { %2372 = vmatpush3.bf16.msra.mxu1 %v2369_v55 }
 0x22a   : > { %v1865_v56 = vpop.f32.mrb[32].mxu0 }
 0x22b   : > { %v1945_v57 = vpop.f32.mrb[32].mxu1  ;;  %v1866_v59 = vpop.f32.mrb[33].mxu0 }
 0x22c   : > { %v1867_v60 = vadd.f32 %v1866_v59, %v1865_v56  ;;  %v1946_v61 = vpop.f32.mrb[33].mxu1 }
 0x22d   : > { %v1947_v62 = vadd.f32 %v1946_v61, %v1945_v57 }
 0x22e   : > { %v1074_v63 = vadd.f32 %v1867_v60, %v3191_v58  ;;  %v1868_v0 = vpop.f32.mrb[34].mxu0 }
 0x22f   : > { %v1948_v1 = vpop.f32.mrb[34].mxu1  ;;  %v1869_v6 = vpop.f32.mrb[35].mxu0 }
 0x230   : > { %v1219_v7 = vadd.f32 %v1947_v62, %v1074_v63  ;;  %v1870_v8 = vadd.f32 %v1869_v6, %v1868_v0  ;;  %v1949_v9 = vpop.f32.mrb[35].mxu1 }
 0x231   : > { %v1950_v10 = vadd.f32 %v1949_v9, %v1948_v1 }
 0x232   : > { %v1297_v11 = vmax.f32 %v1219_v7, 0.0  ;;  %v1079_v12 = vadd.f32 %v1870_v8, %v3191_v58  ;;  %v1871_v13 = vpop.f32.mrb[36].mxu0 }
 0x233   : > { %v1951_v14 = vpop.f32.mrb[36].mxu1  ;;  %v1872_v15 = vpop.f32.mrb[37].mxu0 }
 0x234   : > { %v1224_v16 = vadd.f32 %v1950_v10, %v1079_v12  ;;  %v1873_v17 = vadd.f32 %v1872_v15, %v1871_v13  ;;  %v1952_v18 = vpop.f32.mrb[37].mxu1  ;;  %2089 = vmatprep.mubr.f32.mxu0 %v1297_v11 }
 0x235   : > { %v1953_v19 = vadd.f32 %v1952_v18, %v1951_v14 }
 0x236   : > { %v1298_v20 = vmax.f32 %v1224_v16, 0.0  ;;  %v1084_v21 = vadd.f32 %v1873_v17, %v3191_v58  ;;  %v1874_v22 = vpop.f32.mrb[38].mxu0 }
 0x237   : > { %v1954_v23 = vpop.f32.mrb[38].mxu1  ;;  %v1875_v24 = vpop.f32.mrb[39].mxu0 }
 0x238   : > { %v1229_v25 = vadd.f32 %v1953_v19, %v1084_v21  ;;  %v1876_v26 = vadd.f32 %v1875_v24, %v1874_v22  ;;  %v1955_v27 = vpop.f32.mrb[39].mxu1  ;;  %2090 = vmatmul.mubr.f32.vlgmr.msra.gmra.mrb[64].mxu0 %v1298_v20 }
 0x239   : > { %v1956_v28 = vadd.f32 %v1955_v27, %v1954_v23 }
 0x23a   : > { %v1299_v29 = vmax.f32 %v1229_v25, 0.0  ;;  %v1089_v2 = vadd.f32 %v1876_v26, %v3191_v58  ;;  %v1877_v3 = vpop.f32.mrb[40].mxu0 }
 0x23b   : > { %v1957_v4 = vpop.f32.mrb[40].mxu1  ;;  %v1878_v5 = vpop.f32.mrb[41].mxu0 }
 0x23c   : > { %v1234_v30 = vadd.f32 %v1956_v28, %v1089_v2  ;;  %v1879_v31 = vadd.f32 %v1878_v5, %v1877_v3  ;;  %v1958_v32 = vpop.f32.mrb[41].mxu1  ;;  %2092 = vmatprep.mubr.f32.mxu0 %v1299_v29 }
 0x23d   : > { %v1959_v33 = vadd.f32 %v1958_v32, %v1957_v4 }
 0x23e   : > { %v1300_v34 = vmax.f32 %v1234_v30, 0.0  ;;  %v1094_v35 = vadd.f32 %v1879_v31, %v3191_v58  ;;  %v1880_v36 = vpop.f32.mrb[42].mxu0 }
 0x23f   : > { %v1960_v37 = vpop.f32.mrb[42].mxu1  ;;  %v1881_v38 = vpop.f32.mrb[43].mxu0 }
 0x240   : > { %v1239_v39 = vadd.f32 %v1959_v33, %v1094_v35  ;;  %v1882_v40 = vadd.f32 %v1881_v38, %v1880_v36  ;;  %v1961_v41 = vpop.f32.mrb[43].mxu1  ;;  %2093 = vmatmul.mubr.f32.gmra.mrb[66].mxu0 %v1300_v34 }
 0x241   : > { %v1962_v42 = vadd.f32 %v1961_v41, %v1960_v37 }
 0x242   : > { %v1301_v43 = vmax.f32 %v1239_v39, 0.0  ;;  %v1099_v44 = vadd.f32 %v1882_v40, %v3191_v58  ;;  %v1883_v45 = vpop.f32.mrb[44].mxu0 }
 0x243   : > { %v1963_v46 = vpop.f32.mrb[44].mxu1  ;;  %v1884_v47 = vpop.f32.mrb[45].mxu0 }
 0x244   : > { %v1244_v48 = vadd.f32 %v1962_v42, %v1099_v44  ;;  %v1885_v49 = vadd.f32 %v1884_v47, %v1883_v45  ;;  %v1964_v50 = vpop.f32.mrb[45].mxu1  ;;  %2095 = vmatprep.mubr.f32.mxu0 %v1301_v43 }
 0x245   : > { %v1965_v51 = vadd.f32 %v1964_v50, %v1963_v46 }
 0x246   : > { %v1302_v52 = vmax.f32 %v1244_v48, 0.0  ;;  %v1104_v53 = vadd.f32 %v1885_v49, %v3191_v58  ;;  %v1886_v54 = vpop.f32.mrb[46].mxu0 }
 0x247   : > { %v1966_v55 = vpop.f32.mrb[46].mxu1  ;;  %v1887_v56 = vpop.f32.mrb[47].mxu0 }
 0x248   : > { %v1249_v57 = vadd.f32 %v1965_v51, %v1104_v53  ;;  %v1888_v59 = vadd.f32 %v1887_v56, %v1886_v54  ;;  %v1967_v60 = vpop.f32.mrb[47].mxu1  ;;  %2096 = vmatmul.mubr.f32.gmra.mrb[68].mxu0 %v1302_v52 }
 0x249   : > { %v1968_v61 = vadd.f32 %v1967_v60, %v1966_v55 }
 0x24a   : > { %v1303_v62 = vmax.f32 %v1249_v57, 0.0  ;;  %v1109_v63 = vadd.f32 %v1888_v59, %v3191_v58  ;;  %v1889_v0 = vpop.f32.mrb[48].mxu0 }
 0x24b   : > { %v1969_v1 = vpop.f32.mrb[48].mxu1  ;;  %v1890_v6 = vpop.f32.mrb[49].mxu0 }
 0x24c   : > { %v1254_v7 = vadd.f32 %v1968_v61, %v1109_v63  ;;  %v1891_v8 = vadd.f32 %v1890_v6, %v1889_v0  ;;  %v1970_v9 = vpop.f32.mrb[49].mxu1  ;;  %2098 = vmatprep.mubr.f32.mxu0 %v1303_v62 }
 0x24d   : > { %v1971_v10 = vadd.f32 %v1970_v9, %v1969_v1 }
 0x24e   : > { %v1304_v11 = vmax.f32 %v1254_v7, 0.0  ;;  %v1114_v12 = vadd.f32 %v1891_v8, %v3191_v58  ;;  %v1892_v13 = vpop.f32.mrb[50].mxu0 }
 0x24f   : > { %v1972_v14 = vpop.f32.mrb[50].mxu1  ;;  %v1893_v15 = vpop.f32.mrb[51].mxu0 }
 0x250   : > { %v1259_v16 = vadd.f32 %v1971_v10, %v1114_v12  ;;  %v1894_v17 = vadd.f32 %v1893_v15, %v1892_v13  ;;  %v1973_v18 = vpop.f32.mrb[51].mxu1  ;;  %2099 = vmatmul.mubr.f32.gmra.mrb[70].mxu0 %v1304_v11  ;;  %v1511_v15 = vld [vmem:[#allocation5 + $0x70] sm:$0xff] }
 0x251   : > { %v1974_v19 = vadd.f32 %v1973_v18, %v1972_v14  ;;  %v1824_v18 = vld [vmem:[%s3294_s6] ss:$0 sm:$0xff] }
 0x252   : > { %v1305_v20 = vmax.f32 %v1259_v16, 0.0  ;;  %v1119_v21 = vadd.f32 %v1894_v17, %v3191_v58  ;;  %v1895_v22 = vpop.f32.mrb[52].mxu0  ;;  %v1512_v16 = vld [vmem:[#allocation5 + $0x78] sm:$0xff] }
 0x253   : > { %v1975_v23 = vpop.f32.mrb[52].mxu1  ;;  %v1896_v24 = vpop.f32.mrb[53].mxu0  ;;  %v2373_v17 = vpack.c.bf16 %v1512_v16, %v1511_v15 }
 0x254   : > { %v1264_v25 = vadd.f32 %v1974_v19, %v1119_v21  ;;  %v1897_v26 = vadd.f32 %v1896_v24, %v1895_v22  ;;  %v1976_v27 = vpop.f32.mrb[53].mxu1  ;;  %2101 = vmatprep.mubr.f32.mxu0 %v1305_v20 }
 0x255   : > { %v1977_v28 = vadd.f32 %v1976_v27, %v1975_v23  ;;  %2374 = vmatprep.subr.bf16.mxu1 %v2373_v17 }
 0x256   : > { %v1306_v29 = vmax.f32 %v1264_v25, 0.0  ;;  %v1124_v2 = vadd.f32 %v1897_v26, %v3191_v58  ;;  %v1898_v3 = vpop.f32.mrb[54].mxu0  ;;  %2376 = vmatpush3.bf16.msra.mxu1 %v2373_v17 }
 0x257   : > { %v1978_v4 = vpop.f32.mrb[54].mxu1  ;;  %v1899_v5 = vpop.f32.mrb[55].mxu0 }
 0x258   : > { %v1269_v30 = vadd.f32 %v1977_v28, %v1124_v2  ;;  %v1900_v31 = vadd.f32 %v1899_v5, %v1898_v3  ;;  %v1979_v32 = vpop.f32.mrb[55].mxu1  ;;  %2102 = vmatmul.mubr.f32.gmra.mrb[72].mxu0 %v1306_v29 }
 0x259   : > { %v1980_v33 = vadd.f32 %v1979_v32, %v1978_v4 }
 0x25a   : > { %v1307_v34 = vmax.f32 %v1269_v30, 0.0  ;;  %v1129_v35 = vadd.f32 %v1900_v31, %v3191_v58  ;;  %v1901_v36 = vpop.f32.mrb[56].mxu0 }
 0x25b   : > { %v1981_v37 = vpop.f32.mrb[56].mxu1  ;;  %v1902_v38 = vpop.f32.mrb[57].mxu0 }
 0x25c   : > { %v1274_v39 = vadd.f32 %v1980_v33, %v1129_v35  ;;  %v1903_v40 = vadd.f32 %v1902_v38, %v1901_v36  ;;  %v1982_v41 = vpop.f32.mrb[57].mxu1  ;;  %2104 = vmatprep.mubr.f32.mxu0 %v1307_v34 }
 0x25d   : > { %v1983_v42 = vadd.f32 %v1982_v41, %v1981_v37 }
 0x25e   : > { %v1308_v43 = vmax.f32 %v1274_v39, 0.0  ;;  %v1134_v44 = vadd.f32 %v1903_v40, %v3191_v58  ;;  %v1904_v45 = vpop.f32.mrb[58].mxu0 }
 0x25f   : > { %v1984_v46 = vpop.f32.mrb[58].mxu1  ;;  %v1905_v47 = vpop.f32.mrb[59].mxu0 }
 0x260   : > { %v1279_v48 = vadd.f32 %v1983_v42, %v1134_v44  ;;  %v1906_v49 = vadd.f32 %v1905_v47, %v1904_v45  ;;  %v1985_v50 = vpop.f32.mrb[59].mxu1  ;;  %2105 = vmatmul.mubr.f32.gmra.mrb[74].mxu0 %v1308_v43 }
 0x261   : > { %v1986_v51 = vadd.f32 %v1985_v50, %v1984_v46 }
 0x262   : > { %v1309_v52 = vmax.f32 %v1279_v48, 0.0  ;;  %v1139_v53 = vadd.f32 %v1906_v49, %v3191_v58  ;;  %v1907_v54 = vpop.f32.mrb[60].mxu0 }
 0x263   : > { %v1987_v55 = vpop.f32.mrb[60].mxu1  ;;  %v1908_v56 = vpop.f32.mrb[61].mxu0 }
 0x264   : > { %v1284_v57 = vadd.f32 %v1986_v51, %v1139_v53  ;;  %v1909_v59 = vadd.f32 %v1908_v56, %v1907_v54  ;;  %v1988_v60 = vpop.f32.mrb[61].mxu1  ;;  %2107 = vmatprep.mubr.f32.mxu0 %v1309_v52 }
 0x265   : > { %v1989_v61 = vadd.f32 %v1988_v60, %v1987_v55 }
 0x266   : > { %v1310_v62 = vmax.f32 %v1284_v57, 0.0  ;;  %v1144_v63 = vadd.f32 %v1909_v59, %v3191_v58  ;;  %v1910_v0 = vpop.f32.mrb[62].mxu0 }
 0x267   : > { %v1990_v1 = vpop.f32.mrb[62].mxu1  ;;  %v1911_v6 = vpop.f32.mrb[63].mxu0 }
 0x268   : > { %v1289_v7 = vadd.f32 %v1989_v61, %v1144_v63  ;;  %v1912_v8 = vadd.f32 %v1911_v6, %v1910_v0  ;;  %v1991_v9 = vpop.f32.mrb[63].mxu1  ;;  %2108 = vmatmul.mubr.f32.gmra.mrb[76].mxu0 %v1310_v62  ;;  %v1825_v63 = vld [vmem:[%s3296_s8] ss:$0 sm:$0xff] }
 0x269   : > { %v1992_v10 = vadd.f32 %v1991_v9, %v1990_v1 }
 0x26a   : > { %v1311_v11 = vmax.f32 %v1289_v7, 0.0  ;;  %v1149_v12 = vadd.f32 %v1912_v8, %v3191_v58 }
 0x26c   : > { %v1294_v13 = vadd.f32 %v1992_v10, %v1149_v12  ;;  %2110 = vmatprep.mubr.f32.mxu0 %v1311_v11 }
 0x26e   : > { %v1312_v14 = vmax.f32 %v1294_v13, 0.0 }
 0x270   : > { %2111 = vmatmul.mubr.f32.gmra.mrb[78].mxu0 %v1312_v14 }
 0x30b   : > { %v2091_v19 = vpop.f32.mrb[64].mxu0 }
 0x30c   : > { %v1408_v20 = vadd.f32 %v2091_v19, %v1824_v18  ;;  %v1402_v21 = vpop.f32.mrb[65].mxu0 }
 0x30d   : > { %v1403_v22 = vadd.f32 %v1824_v18, %v1402_v21 }
 0x30e   : > { %v1482_v24 = vmax.f32 %v1408_v20, 0.0 }
 0x30f   : > { %v1481_v23 = vmax.f32 %v1403_v22, 0.0 }
 0x311   : > { %2145 = vmatprep.mubr.f32.mxu1 %v1481_v23 }
 0x312   : > { %2146 = vmatmul.mubr.f32.vlgmr.msra.gmra.mrb[64].mxu1 %v1482_v24 }
 0x313   : > { %v2094_v58 = vpop.f32.mrb[66].mxu0 }
 0x314   : > { %v1418_v25 = vadd.f32 %v2094_v58, %v1824_v18  ;;  %v1412_v26 = vpop.f32.mrb[67].mxu0 }
 0x315   : > { %v1413_v27 = vadd.f32 %v1824_v18, %v1412_v26 }
 0x316   : > { %v1484_v29 = vmax.f32 %v1418_v25, 0.0 }
 0x317   : > { %v1483_v28 = vmax.f32 %v1413_v27, 0.0 }
 0x319   : > { %2148 = vmatprep.mubr.f32.mxu1 %v1483_v28 }
 0x31a   : > { %2149 = vmatmul.mubr.f32.gmra.mrb[66].mxu1 %v1484_v29 }
 0x31b   : > { %v2097_v2 = vpop.f32.mrb[68].mxu0 }
 0x31c   : > { %v1428_v3 = vadd.f32 %v2097_v2, %v1824_v18  ;;  %v1422_v4 = vpop.f32.mrb[69].mxu0 }
 0x31d   : > { %v1423_v5 = vadd.f32 %v1824_v18, %v1422_v4 }
 0x31e   : > { %v1486_v31 = vmax.f32 %v1428_v3, 0.0 }
 0x31f   : > { %v1485_v30 = vmax.f32 %v1423_v5, 0.0 }
 0x321   : > { %2151 = vmatprep.mubr.f32.mxu1 %v1485_v30 }
 0x322   : > { %2152 = vmatmul.mubr.f32.gmra.mrb[68].mxu1 %v1486_v31 }
 0x323   : > { %v2100_v32 = vpop.f32.mrb[70].mxu0 }
 0x324   : > { %v1438_v33 = vadd.f32 %v2100_v32, %v1824_v18  ;;  %v1432_v34 = vpop.f32.mrb[71].mxu0 }
 0x325   : > { %v1433_v35 = vadd.f32 %v1824_v18, %v1432_v34 }
 0x326   : > { %v1488_v37 = vmax.f32 %v1438_v33, 0.0 }
 0x327   : > { %v1487_v36 = vmax.f32 %v1433_v35, 0.0 }
 0x329   : > { %2154 = vmatprep.mubr.f32.mxu1 %v1487_v36 }
 0x32a   : > { %2155 = vmatmul.mubr.f32.gmra.mrb[70].mxu1 %v1488_v37 }
 0x32b   : > { %v2103_v38 = vpop.f32.mrb[72].mxu0 }
 0x32c   : > { %v1448_v39 = vadd.f32 %v2103_v38, %v1824_v18  ;;  %v1442_v40 = vpop.f32.mrb[73].mxu0 }
 0x32d   : > { %v1443_v41 = vadd.f32 %v1824_v18, %v1442_v40 }
 0x32e   : > { %v1490_v43 = vmax.f32 %v1448_v39, 0.0 }
 0x32f   : > { %v1489_v42 = vmax.f32 %v1443_v41, 0.0 }
 0x331   : > { %2157 = vmatprep.mubr.f32.mxu1 %v1489_v42 }
 0x332   : > { %2158 = vmatmul.mubr.f32.gmra.mrb[72].mxu1 %v1490_v43 }
 0x333   : > { %v2106_v44 = vpop.f32.mrb[74].mxu0 }
 0x334   : > { %v1458_v45 = vadd.f32 %v2106_v44, %v1824_v18  ;;  %v1452_v46 = vpop.f32.mrb[75].mxu0 }
 0x335   : > { %v1453_v47 = vadd.f32 %v1824_v18, %v1452_v46 }
 0x336   : > { %v1492_v49 = vmax.f32 %v1458_v45, 0.0 }
 0x337   : > { %v1491_v48 = vmax.f32 %v1453_v47, 0.0 }
 0x339   : > { %2160 = vmatprep.mubr.f32.mxu1 %v1491_v48 }
 0x33a   : > { %2161 = vmatmul.mubr.f32.gmra.mrb[74].mxu1 %v1492_v49 }
 0x33b   : > { %v2109_v50 = vpop.f32.mrb[76].mxu0 }
 0x33c   : > { %v1468_v51 = vadd.f32 %v2109_v50, %v1824_v18  ;;  %v1462_v52 = vpop.f32.mrb[77].mxu0 }
 0x33d   : > { %v1463_v53 = vadd.f32 %v1824_v18, %v1462_v52 }
 0x33e   : > { %v1494_v55 = vmax.f32 %v1468_v51, 0.0 }
 0x33f   : > { %v1493_v54 = vmax.f32 %v1463_v53, 0.0 }
 0x341   : > { %2163 = vmatprep.mubr.f32.mxu1 %v1493_v54 }
 0x342   : > { %2164 = vmatmul.mubr.f32.gmra.mrb[76].mxu1 %v1494_v55 }
 0x343   : > { %v2112_v56 = vpop.f32.mrb[78].mxu0 }
 0x344   : > { %v1478_v57 = vadd.f32 %v2112_v56, %v1824_v18  ;;  %v1472_v59 = vpop.f32.mrb[79].mxu0 }
 0x345   : > { %v1473_v60 = vadd.f32 %v1824_v18, %v1472_v59 }
 0x346   : > { %v1496_v62 = vmax.f32 %v1478_v57, 0.0 }
 0x347   : > { %v1495_v61 = vmax.f32 %v1473_v60, 0.0 }
 0x349   : > { %2166 = vmatprep.mubr.f32.mxu1 %v1495_v61 }
 0x34a   : > { %2167 = vmatmul.mubr.f32.gmra.mrb[78].mxu1 %v1496_v62 }
 0x3e5   : > { %v2147_v0 = vpop.f32.mrb[64].mxu1 }
 0x3e6   : > { %v1592_v1 = vadd.f32 %v2147_v0, %v1825_v63  ;;  %v1586_v6 = vpop.f32.mrb[65].mxu1 }
 0x3e7   : > { %v1587_v7 = vadd.f32 %v1825_v63, %v1586_v6 }
 0x3e8   : > { %1666 = vst [vmem:[%s3218_s21 + $0x8] sm:$0xff] %v1592_v1 }
 0x3e9   : > { %1665 = vst [vmem:[%s3218_s21] sm:$0xff] %v1587_v7 }
 0x3ed   : > { %v2150_v8 = vpop.f32.mrb[66].mxu1 }
 0x3ee   : > { %v1602_v9 = vadd.f32 %v2150_v8, %v1825_v63  ;;  %v1596_v10 = vpop.f32.mrb[67].mxu1 }
 0x3ef   : > { %v1597_v11 = vadd.f32 %v1825_v63, %v1596_v10 }
 0x3f0   : > { %1668 = vst [vmem:[%s3218_s21 + $0x18] sm:$0xff] %v1602_v9 }
 0x3f1   : > { %1667 = vst [vmem:[%s3218_s21 + $0x10] sm:$0xff] %v1597_v11 }
 0x3f5   : > { %v2153_v12 = vpop.f32.mrb[68].mxu1 }
 0x3f6   : > { %v1612_v13 = vadd.f32 %v2153_v12, %v1825_v63  ;;  %v1606_v14 = vpop.f32.mrb[69].mxu1 }
 0x3f7   : > { %v1607_v15 = vadd.f32 %v1825_v63, %v1606_v14 }
 0x3f8   : > { %1670 = vst [vmem:[%s3218_s21 + $0x28] sm:$0xff] %v1612_v13 }
 0x3f9   : > { %1669 = vst [vmem:[%s3218_s21 + $0x20] sm:$0xff] %v1607_v15 }
 0x3fd   : > { %v2156_v16 = vpop.f32.mrb[70].mxu1 }
 0x3fe   : > { %v1622_v17 = vadd.f32 %v2156_v16, %v1825_v63  ;;  %v1616_v18 = vpop.f32.mrb[71].mxu1 }
 0x3ff   : > { %v1617_v19 = vadd.f32 %v1825_v63, %v1616_v18 }
 0x400   : > { %1672 = vst [vmem:[%s3218_s21 + $0x38] sm:$0xff] %v1622_v17 }
 0x401   : > { %1671 = vst [vmem:[%s3218_s21 + $0x30] sm:$0xff] %v1617_v19 }
 0x405   : > { %v2159_v20 = vpop.f32.mrb[72].mxu1 }
 0x406   : > { %v1632_v21 = vadd.f32 %v2159_v20, %v1825_v63  ;;  %v1626_v22 = vpop.f32.mrb[73].mxu1 }
 0x407   : > { %v1627_v23 = vadd.f32 %v1825_v63, %v1626_v22 }
 0x408   : > { %1674 = vst [vmem:[%s3218_s21 + $0x48] sm:$0xff] %v1632_v21 }
 0x409   : > { %1673 = vst [vmem:[%s3218_s21 + $0x40] sm:$0xff] %v1627_v23 }
 0x40d   : > { %v2162_v24 = vpop.f32.mrb[74].mxu1 }
 0x40e   : > { %v1642_v58 = vadd.f32 %v2162_v24, %v1825_v63  ;;  %v1636_v25 = vpop.f32.mrb[75].mxu1 }
 0x40f   : > { %v1637_v26 = vadd.f32 %v1825_v63, %v1636_v25 }
 0x410   : > { %1676 = vst [vmem:[%s3218_s21 + $0x58] sm:$0xff] %v1642_v58 }
 0x411   : > { %1675 = vst [vmem:[%s3218_s21 + $0x50] sm:$0xff] %v1637_v26 }
 0x415   : > { %v2165_v27 = vpop.f32.mrb[76].mxu1 }
 0x416   : > { %v1652_v28 = vadd.f32 %v2165_v27, %v1825_v63  ;;  %v1646_v29 = vpop.f32.mrb[77].mxu1 }
 0x417   : > { %v1647_v2 = vadd.f32 %v1825_v63, %v1646_v29 }
 0x418   : > { %1678 = vst [vmem:[%s3218_s21 + $0x68] sm:$0xff] %v1652_v28 }
 0x419   : > { %1677 = vst [vmem:[%s3218_s21 + $0x60] sm:$0xff] %v1647_v2 }
 0x41d   : > { %v2168_v3 = vpop.f32.mrb[78].mxu1 }
 0x41e   : > { %v1662_v4 = vadd.f32 %v2168_v3, %v1825_v63  ;;  %v1656_v5 = vpop.f32.mrb[79].mxu1 }
 0x41f   : > { %v1657_v30 = vadd.f32 %v1825_v63, %v1656_v5 }
 0x420   : > { %1680 = vst [vmem:[%s3218_s21 + $0x78] sm:$0xff] %v1662_v4 }
 0x421   : > { %1679 = vst [vmem:[%s3218_s21 + $0x70] sm:$0xff] %v1657_v30 }
 0x422   : > { %2510 = shalt.err (!%p2507_p11)
}
 0x423   : > { %s2511_s15 = scalar_lea.hbm %s3239_s22, 2048  ;;  %s2515_s26 = scalar_lea.hbm %s3297_s9, 4096 }
 0x424   : > { %p2512_p13 = scmp.ne.s32.totalorder %s3239_s22, %s2511_s15  ;;  %p2516_p6 = scmp.lt.u32.totalorder %s3239_s22, %s3297_s9 }
 0x425   : > { %p2517_p9 = scmp.lt.u32.totalorder %s2515_s26, %s2511_s15  ;;  %p2519_p10 = scmp.lt.u32.totalorder %s2511_s15, %s3239_s22 }
 0x426   : > { %p2513_p5 = pnand %p2512_p13, %p3317_p1 }
 0x427   : > { %p2518_p12 = por %p2517_p9, %p2516_p6 }
 0x428   : > { %p2514_p0 = pneg %p2513_p5 }
 0x429   : > { %p2520_p2 = por %p2519_p10, %p2518_p12 }
 0x42b   : > { %p2521_p3 = pnand %p2520_p2, %p2514_p0 }
 0x42d   : > { %2524 = shalt.err (!%p2521_p3)
}
 0x42e   : > { %s2574_s29 = smov 128   ;;  %s2575_s16 = smov 8  }
 0x42f   : > { %2385 = dma.vmem_to_hbm [thread:$0]  (%p3317_p1), %s3241_s14, 2048, %s3239_s22, %s3247_s25, %s2574_s29, %s2574_s29, %s2575_s16  }
 0x430 PF: > { %p2402_p4 = scmp.ge.s32.totalorder %s2567_s12, 2  ;;  %s1710_s11 = sand.u32 1, %s2555_s30  }
 0x431   : > { %p3318_p7 = scmp.ne.s32.totalorder %s3308_s20, 0  ;;  %s1711_s13 = scalar_lea.sflag [#allocation4], %s1710_s11 }
 0x433   : > { %p2395_p8 = pnand %p2402_p4, %p3318_p7 }
 0x435   : > { %2550 = dma.done.wait (!%p2395_p8), %s1711_s13, 2048  }
 0x436   : > { %2552 = vsyncadd (!%p2395_p8), %s1711_s13, 4294965248  ;;  %s3319_s12 = sld [smem:[#allocation12_spill]]  ;;  %s3320_s17 = sld [smem:[#allocation11_spill]] }
 0x437   : > { %s3321_s11 = sld [smem:[#allocation13_spill]]  ;;  %s3322_s30 = smov %s2559_s10 }
 0x43c   : > { %p21_p11 = scmp.ge.s32.totalorder %s3319_s12, 4   ;;  %s3323_s10 = smov %s3320_s17 }
 0x43e   :  { %23 = sbr.rel (!%p21_p11) target bundleno = 5 (0x5), region = 100 }
 0x445   :  { %1716 = vsyncpa [#allocation3], 1 }
 0x446   :  { %1718 = vsyncpa [#allocation3 + $0x1], 1 }
 0x447   :  { %1719 = vsyncpa [#allocation6], 1 }
 0x448   :  { %1720 = vsyncpa [#allocation4], 1 }
 0x449   :  { %1722 = vsyncpa [#allocation4 + $0x1], 1 }

</bundles_post_ra>
